<compile_context>
chip_gen: v7x
topology: tpu7x:2x2x1
jax: 0.10.0
libtpu: 0.0.40
codegen_flags: <defaults>
</compile_context>

<pallas_src>
import functools

import numpy as np
import jax
import jax.numpy as jnp
from jax import lax
from jax.experimental import pallas as pl
from jax.experimental.pallas import tpu as pltpu

SCALE = float(np.sqrt(0.5))   # torch.sqrt(torch.FloatTensor([0.5]))
_NEG_BIG = -1e9               # "minus infinity" for masked softmax columns


def _round_up(x, m):
    return (x + m - 1) // m * m


def _tpu_vmem_capacity_bytes():
    """Physical VMEM capacity; conservative 64 MiB fallback if undetectable."""
    try:
        info = pltpu.get_tpu_info()
        cap = getattr(info, "vmem_capacity_bytes", None)
        if cap:
            return int(cap)
    except Exception:
        pass
    return 64 * 1024 * 1024


def _const_spec(shape):
    """BlockSpec for a grid-invariant (weight) input: fetched once,
    single-buffered so it does not pay for a second pipeline buffer."""
    idx = lambda b, v: (0,) * len(shape)
    buffered = getattr(pl, "Buffered", None)
    if buffered is not None:
        try:
            return pl.BlockSpec(shape, idx, pipeline_mode=buffered(1))
        except Exception:
            pass
    return pl.BlockSpec(shape, idx)


def _estimate_vmem_bytes(Bblk, T, E, H, S_pad, Vt, K, n_layers, fuse_taps):
    """Rough per-grid-step VMEM working-set estimate in bytes."""
    BT = Bblk * T
    bf, f4 = 2, 4
    b = 0
    # double-buffered per-batch-block activations
    b += 2 * Bblk * T * E * f4                       # embedded (f32)
    b += 2 * 2 * Bblk * S_pad * E * bf               # enc_conved + enc_combined
    # double-buffered streamed fc_out tiles
    b += 2 * (E * Vt * bf + Vt * f4)
    # single-buffered constant weights + biases
    b += 4 * E * H * bf + n_layers * K * H * 2 * H * bf
    b += (2 * H + 2 * E + n_layers * 2 * H) * f4
    # outputs (logits double buffered; attn / lse resident across vocab tiles)
    b += 2 * Bblk * T * Vt * f4
    b += 2 * Bblk * T * S_pad * f4
    b += 2 * Bblk * T * f4
    # scratch (cached hid2emb output + running max/sum)
    b += BT * E * bf + 2 * BT * f4
    # live layer-stack intermediates (rough upper bound)
    lhs = (K * H) if fuse_taps else H
    b += BT * (lhs + 4 * H + 2 * E) * f4 + 2 * Bblk * T * S_pad * f4
    return b


def _pick_batch_block(B, budget_bytes, keep_two_steps, est_fn):
    for d in range(B, 0, -1):
        if B % d:
            continue
        if keep_two_steps and B >= 2 and B // d < 2:
            continue
        if est_fn(d) <= budget_bytes:
            return d
    return 1


def _decoder_kernel(
    emb_ref, enc_c_ref, enc_k_ref,
    w_e2h_ref, b_e2h_ref, wc_ref, bc_ref,
    w_ah2e_ref, b_ah2e_ref, w_ae2h_ref, b_ae2h_ref,
    w_h2e_ref, b_h2e_ref, w_fc_ref, b_fc_ref,
    out_ref, lse_ref, attn_ref,
    ce_ref, m_ref, l_ref,
    *, Bblk, T, E, H, S, S_pad, Vt, K, n_layers, trg_pad_idx, fuse_taps,
):
    f32 = jnp.float32
    bf16 = jnp.bfloat16
    scale = f32(SCALE)
    BT = Bblk * T
    v_idx = pl.program_id(1)

    def mm(x_f32, w_bf16):
        # bf16 MXU matmul with f32 accumulation.
        return jnp.dot(x_f32.astype(bf16), w_bf16, preferred_element_type=f32)

    # ---- Phase A (first vocab tile of each batch block): run the whole
    #      decoder layer stack once; cache hid2emb output + attention.      ----
    @pl.when(v_idx == 0)
    def _layer_stack():
        emb2 = emb_ref[...].reshape(BT, E)            # f32
        enc_c = enc_c_ref[...]                        # [Bblk, S_pad, E] bf16
        enc_k = enc_k_ref[...]                        # [Bblk, S_pad, E] bf16
        w_e2h = w_e2h_ref[...]
        w_ah2e = w_ah2e_ref[...]
        w_ae2h = w_ae2h_ref[...]
        w_h2e = w_h2e_ref[...]

        # Bias broadcasts hoisted out of the layer loop (no CSE on broadcasts).
        b_ah2e = jnp.broadcast_to(b_ah2e_ref[...], (BT, E))
        b_ae2h = jnp.broadcast_to(b_ae2h_ref[...], (BT, H))

        conv_in = mm(emb2, w_e2h) + b_e2h_ref[...]    # emb2hid  [BT, H]

        pad_block = jnp.full((Bblk, K - 1, H), f32(trg_pad_idx), f32)
        if S_pad > S:
            s_mask = lax.broadcasted_iota(jnp.int32, (1, T, S_pad), 2) >= S

        attn = jnp.zeros((Bblk, T, S_pad), f32)
        for l in range(n_layers):
            # Causal conv1d: left-pad (K-1) steps with trg_pad_idx.
            x3 = conv_in.reshape(Bblk, T, H)
            padded = jnp.concatenate([pad_block, x3], axis=1)   # [Bblk,T+K-1,H]
            if fuse_taps:
                # Small H: fuse the K taps into one [BT, K*H] x [K*H, 2H] matmul.
                xcat = jnp.concatenate(
                    [padded[:, j:j + T, :] for j in range(K)], axis=2)
                total = mm(xcat.reshape(BT, K * H), wc_ref[l]) + bc_ref[l]
            else:
                # Large H: K accumulated per-tap matmuls (no lane concat).
                wc_l = wc_ref[l]
                total = jnp.broadcast_to(bc_ref[l], (BT, 2 * H))
                for j in range(K):
                    total = total + mm(padded[:, j:j + T, :].reshape(BT, H),
                                       wc_l[j * H:(j + 1) * H, :])

            # GLU over channels (f32).
            conved_h = total[:, :H] * jax.nn.sigmoid(total[:, H:])   # [BT, H]

            # ---- attention ----
            conved_emb = mm(conved_h, w_ah2e) + b_ah2e               # [BT, E]
            combined = ((conved_emb + emb2) * scale).reshape(Bblk, T, E)
            energy = lax.dot_general(combined.astype(bf16), enc_c,
                                     (((2,), (2,)), ((0,), (0,))),
                                     preferred_element_type=f32)     # [Bblk,T,S_pad]
            if S_pad > S:
                energy = jnp.where(s_mask, f32(_NEG_BIG), energy)
            emax = jnp.max(energy, axis=-1, keepdims=True)
            ee = jnp.exp(energy - emax)
            attn = ee * pl.reciprocal(jnp.sum(ee, axis=-1, keepdims=True),
                                      approx=True)                   # softmax
            attended = lax.dot_general(attn.astype(bf16), enc_k,
                                       (((2,), (1,)), ((0,), (0,))),
                                       preferred_element_type=f32)   # [Bblk,T,E]
            attended_h = mm(attended.reshape(BT, E), w_ae2h) + b_ae2h
            conv_in = ((conved_h + attended_h) * scale + conv_in) * scale

        conved_e = mm(conv_in, w_h2e) + b_h2e_ref[...]               # [BT, E]
        ce_ref[...] = conved_e.astype(bf16)
        attn_ref[...] = attn.astype(attn_ref.dtype)
        m_ref[...] = jnp.full((BT, 1), -jnp.inf, f32)
        l_ref[...] = jnp.zeros((BT, 1), f32)

    # ---- Phase B (every vocab tile): fc_out matmul + online logsumexp. ----
    logits = (jnp.dot(ce_ref[...], w_fc_ref[...], preferred_element_type=f32)
              + b_fc_ref[...])                                       # [BT, Vt]
    tmax = jnp.max(logits, axis=-1, keepdims=True)
    m_old = m_ref[...]
    m_new = jnp.maximum(m_old, tmax)
    l_ref[...] = (l_ref[...] * jnp.exp(m_old - m_new) +
                  jnp.sum(jnp.exp(logits - m_new), axis=-1, keepdims=True))
    m_ref[...] = m_new
    out_ref[...] = logits.reshape(Bblk, T, Vt).astype(out_ref.dtype)

    @pl.when(v_idx == pl.num_programs(1) - 1)
    def _finalize():
        lse_ref[...] = (m_ref[...] + jnp.log(l_ref[...])).reshape(Bblk, T, 1)


def prepare_decoder_params(params, *, kernel_size, n_layers, trg_pad_idx,
                           vocab_tile=2048):
    """One-time weight preprocessing (bf16 cast, vocab pad, conv-tap reshape).
    Call once and reuse across forward calls (avoids re-casting/re-padding the
    large [E, V] fc weight in HBM on every call)."""
    E = params["tok_emb"].shape[1]
    H = params["w_e2h"].shape[1]
    V = params["w_fc"].shape[1]
    K = kernel_size

    Vt = min(_round_up(V, 128), _round_up(vocab_tile, 128))
    V_pad = _round_up(V, Vt)

    w_fc = params["w_fc"]
    b_fc = params["b_fc"]
    if V_pad != V:
        # Zero weights / -1e9 bias on padded vocab columns: they vanish from
        # the logsumexp and are sliced off after the kernel.
        w_fc = jnp.pad(w_fc, ((0, 0), (0, V_pad - V)))
        b_fc = jnp.pad(b_fc, ((0, 0), (0, V_pad - V)), constant_values=_NEG_BIG)

    bf16, f32 = jnp.bfloat16, jnp.float32
    prep = dict(
        tok_emb=params["tok_emb"].astype(f32),
        pos_emb=params["pos_emb"].astype(f32),
        w_e2h=params["w_e2h"].astype(bf16), b_e2h=params["b_e2h"].astype(f32),
        # Conv taps stacked so tap j occupies rows [j*H, (j+1)*H) of wc[l].
        wc=params["wc"].reshape(n_layers, K * H, 2 * H).astype(bf16),
        bc=params["bc"].astype(f32),
        w_ah2e=params["w_ah2e"].astype(bf16), b_ah2e=params["b_ah2e"].astype(f32),
        w_ae2h=params["w_ae2h"].astype(bf16), b_ae2h=params["b_ae2h"].astype(f32),
        w_h2e=params["w_h2e"].astype(bf16), b_h2e=params["b_h2e"].astype(f32),
        w_fc=w_fc.astype(bf16), b_fc=b_fc.astype(f32),
    )
    meta = dict(E=E, H=H, V=V, V_pad=V_pad, Vt=Vt, K=K, n_layers=n_layers,
                trg_pad_idx=trg_pad_idx)
    return prep, meta


def cnn_decoder_forward(trg, encoder_conved, encoder_combined, prepared, *,
                        batch_block=None, fuse_conv_taps=None,
                        out_dtype=jnp.float32):
    prep, meta = prepared
    B, T = trg.shape
    S = encoder_conved.shape[1]
    E, H, V = meta["E"], meta["H"], meta["V"]
    V_pad, Vt = meta["V_pad"], meta["Vt"]
    K, n_layers = meta["K"], meta["n_layers"]
    trg_pad_idx = meta["trg_pad_idx"]

    S_pad = _round_up(S, 128)       # lane-dense attention output
    NV = V_pad // Vt

    f32, bf16 = jnp.float32, jnp.bfloat16

    # Conv-tap fusion only for small H; large H uses per-tap accumulation.
    if fuse_conv_taps is None:
        fuse_conv_taps = H < 256

    # ---- per-generation sizing ----
    vmem_cap = _tpu_vmem_capacity_bytes()
    # ~78% of physical VMEM: ~100 MiB on 128-MiB v5e/v6e, ~50 MiB on 64-MiB v7x.
    vmem_limit = max(32 * 1024 * 1024, int(vmem_cap * 0.78))
    budget = int(vmem_limit * 0.85)
    # 64-MiB/TC parts (v7x-like) have 2 TensorCores: keep >= 2 batch grid steps
    # so the "parallel" axis can shard across cores.  Single-TC v5e/v6e just
    # maximize the block (their grid is a serial loop).
    keep_two_steps = vmem_cap <= 80 * 1024 * 1024

    if batch_block is None:
        est = lambda bb: _estimate_vmem_bytes(bb, T, E, H, S_pad, Vt, K,
                                              n_layers, fuse_conv_taps)
        batch_block = _pick_batch_block(B, budget, keep_two_steps, est)
    assert B % batch_block == 0
    Bblk = batch_block

    # Glue: embedding gathers in plain JAX (kept in f32; reused in f32 adds).
    pos = jnp.arange(T)
    embedded = (prep["tok_emb"][trg] +
                prep["pos_emb"][pos][None, :, :]).astype(f32)

    # Encoder tensors: zero-pad the source dim (masked in-kernel), store bf16.
    def pad_s(x):
        x = x.astype(f32)
        if S_pad != S:
            x = jnp.pad(x, ((0, 0), (0, S_pad - S), (0, 0)))
        return x.astype(bf16)

    enc_c = pad_s(encoder_conved)
    enc_k = pad_s(encoder_combined)

    kernel = functools.partial(
        _decoder_kernel, Bblk=Bblk, T=T, E=E, H=H, S=S, S_pad=S_pad, Vt=Vt,
        K=K, n_layers=n_layers, trg_pad_idx=trg_pad_idx,
        fuse_taps=fuse_conv_taps)

    in_specs = [
        pl.BlockSpec((Bblk, T, E), lambda b, v: (b, 0, 0)),        # embedded
        pl.BlockSpec((Bblk, S_pad, E), lambda b, v: (b, 0, 0)),    # enc_conved
        pl.BlockSpec((Bblk, S_pad, E), lambda b, v: (b, 0, 0)),    # enc_combined
        _const_spec((E, H)),                                       # emb2hid W
        _const_spec((1, H)),                                       # emb2hid b
        _const_spec((n_layers, K * H, 2 * H)),                     # conv W
        _const_spec((n_layers, 1, 2 * H)),                         # conv b
        _const_spec((H, E)),                                       # attn_hid2emb W
        _const_spec((1, E)),                                       # attn_hid2emb b
        _const_spec((E, H)),                                       # attn_emb2hid W
        _const_spec((1, H)),                                       # attn_emb2hid b
        _const_spec((H, E)),                                       # hid2emb W
        _const_spec((1, E)),                                       # hid2emb b
        pl.BlockSpec((E, Vt), lambda b, v: (0, v)),                # fc_out W tile
        pl.BlockSpec((1, Vt), lambda b, v: (0, v)),                # fc_out b tile
    ]
    out_specs = [
        pl.BlockSpec((Bblk, T, Vt), lambda b, v: (b, 0, v)),       # raw logits
        pl.BlockSpec((Bblk, T, 1), lambda b, v: (b, 0, 0)),        # logsumexp
        pl.BlockSpec((Bblk, T, S_pad), lambda b, v: (b, 0, 0)),    # attention
    ]
    out_shape = (jax.ShapeDtypeStruct((B, T, V_pad), out_dtype),
                 jax.ShapeDtypeStruct((B, T, 1), jnp.float32),
                 jax.ShapeDtypeStruct((B, T, S_pad), out_dtype))
    scratch_shapes = [pltpu.VMEM((Bblk * T, E), bf16),   # cached hid2emb output
                      pltpu.VMEM((Bblk * T, 1), f32),    # running max
                      pltpu.VMEM((Bblk * T, 1), f32)]    # running sum(exp)

    logits, lse, attn = pl.pallas_call(
        kernel,
        grid=(B // Bblk, NV),
        in_specs=in_specs,
        out_specs=out_specs,
        out_shape=out_shape,
        scratch_shapes=scratch_shapes,
        compiler_params=pltpu.CompilerParams(
            dimension_semantics=("parallel", "arbitrary"),
            vmem_limit_bytes=vmem_limit),
    )(embedded, enc_c, enc_k,
      prep["w_e2h"], prep["b_e2h"], prep["wc"], prep["bc"],
      prep["w_ah2e"], prep["b_ah2e"], prep["w_ae2h"], prep["b_ae2h"],
      prep["w_h2e"], prep["b_h2e"], prep["w_fc"], prep["b_fc"])

    # log_softmax = logits - logsumexp: a cheap fused XLA elementwise pass
    # (avoids re-running the tiled fc matmul for a 2nd in-kernel vocab pass).
    log_probs = (logits[..., :V].astype(jnp.float32) - lse).astype(out_dtype)
    return log_probs, attn[..., :S]


def init_params(key, *, output_dim, emb_dim, hid_dim, n_layers, kernel_size,
                max_length):
    ks = jax.random.split(key, 14)

    def w(k, shape, s=0.1):
        return (s * jax.random.normal(k, shape)).astype(jnp.float32)

    return dict(
        tok_emb=w(ks[0], (output_dim, emb_dim)),
        pos_emb=w(ks[1], (max_length, emb_dim)),
        w_e2h=w(ks[2], (emb_dim, hid_dim)),
        b_e2h=w(ks[3], (1, hid_dim)),
        wc=w(ks[4], (n_layers * kernel_size, hid_dim, 2 * hid_dim)),
        bc=w(ks[5], (n_layers, 1, 2 * hid_dim)),
        w_ah2e=w(ks[6], (hid_dim, emb_dim)),
        b_ah2e=w(ks[7], (1, emb_dim)),
        w_ae2h=w(ks[8], (emb_dim, hid_dim)),
        b_ae2h=w(ks[9], (1, hid_dim)),
        w_h2e=w(ks[10], (hid_dim, emb_dim)),
        b_h2e=w(ks[11], (1, emb_dim)),
        w_fc=w(ks[12], (emb_dim, output_dim)),
        b_fc=w(ks[13], (1, output_dim)),
    )


def reference_forward(trg, enc_c, enc_k, params, *, kernel_size, n_layers,
                      trg_pad_idx):
    """Pure-JAX (f32) replica of CNNDecoder.forward (dropout = identity)."""
    B, T = trg.shape
    H = params["w_e2h"].shape[1]
    K = kernel_size
    embedded = params["tok_emb"][trg] + params["pos_emb"][jnp.arange(T)][None]
    conv_input = embedded @ params["w_e2h"] + params["b_e2h"]
    attn = None
    for l in range(n_layers):
        padded = jnp.concatenate(
            [jnp.full((B, K - 1, H), float(trg_pad_idx), jnp.float32),
             conv_input], axis=1)
        total = jnp.zeros((B, T, 2 * H), jnp.float32) + params["bc"][l]
        for j in range(K):
            total = total + padded[:, j:j + T, :] @ params["wc"][l * K + j]
        conved_h = total[..., :H] * jax.nn.sigmoid(total[..., H:])
        conved_emb = conved_h @ params["w_ah2e"] + params["b_ah2e"]
        combined = (conved_emb + embedded) * SCALE
        energy = jnp.einsum("bte,bse->bts", combined, enc_c)
        attn = jax.nn.softmax(energy, axis=-1)
        attended = jnp.einsum("bts,bse->bte", attn, enc_k)
        attended_h = attended @ params["w_ae2h"] + params["b_ae2h"]
        conv_input = ((conved_h + attended_h) * SCALE + conv_input) * SCALE
    conved_e = conv_input @ params["w_h2e"] + params["b_h2e"]
    logits = conved_e @ params["w_fc"] + params["b_fc"]
    return jax.nn.log_softmax(logits, axis=-1), attn


if __name__ == "__main__":
    # Module hyperparameters (small, consistent with the forward pass).
    output_dim, emb_dim, hid_dim = 48, 32, 32
    n_layers, kernel_size, trg_pad_idx, max_length = 2, 3, 1, 100
    B, T, S = 4, 8, 16

    key = jax.random.PRNGKey(0)
    kp, kt, ke1, ke2 = jax.random.split(key, 4)

    params = init_params(kp, output_dim=output_dim, emb_dim=emb_dim,
                         hid_dim=hid_dim, n_layers=n_layers,
                         kernel_size=kernel_size, max_length=max_length)

    trg = jax.random.randint(kt, (B, T), 0, output_dim, dtype=jnp.int32)
    encoder_conved = jax.random.normal(ke1, (B, S, emb_dim), jnp.float32)
    encoder_combined = jax.random.normal(ke2, (B, S, emb_dim), jnp.float32)

    # One-time weight preprocessing (bf16 cast / vocab pad / tap reshape).
    prepared = prepare_decoder_params(params, kernel_size=kernel_size,
                                      n_layers=n_layers,
                                      trg_pad_idx=trg_pad_idx)

    ref_out, ref_attn = reference_forward(
        trg, encoder_conved, encoder_combined, params,
        kernel_size=kernel_size, n_layers=n_layers, trg_pad_idx=trg_pad_idx)

    # Default path (fused conv taps since H < 256).
    out, attn = cnn_decoder_forward(trg, encoder_conved, encoder_combined,
                                    prepared)
    jax.block_until_ready((out, attn))
    np.testing.assert_allclose(np.asarray(out), np.asarray(ref_out),
                               rtol=2e-2, atol=2e-2)
    np.testing.assert_allclose(np.asarray(attn), np.asarray(ref_attn),
                               rtol=2e-2, atol=2e-2)

    # Also exercise the per-tap (large-H) conv path at these small shapes.
    out2, attn2 = cnn_decoder_forward(trg, encoder_conved, encoder_combined,
                                      prepared, fuse_conv_taps=False)
    jax.block_until_ready((out2, attn2))
    np.testing.assert_allclose(np.asarray(out2), np.asarray(ref_out),
                               rtol=2e-2, atol=2e-2)
    np.testing.assert_allclose(np.asarray(attn2), np.asarray(ref_attn),
                               rtol=2e-2, atol=2e-2)

    print("KERNEL_OK")
</pallas_src>

<mosaic_0001>
module attributes {stable_mosaic.version = 11 : i64} {
  func.func @_decoder_kernel(%arg0: i32, %arg1: i32, %arg2: memref<2x8x32xf32, #tpu.memory_space<vmem>>, %arg3: memref<2x128x32xbf16, #tpu.memory_space<vmem>>, %arg4: memref<2x128x32xbf16, #tpu.memory_space<vmem>>, %arg5: memref<32x32xbf16, #tpu.memory_space<vmem>>, %arg6: memref<1x32xf32, #tpu.memory_space<vmem>>, %arg7: memref<2x96x64xbf16, #tpu.memory_space<vmem>>, %arg8: memref<2x1x64xf32, #tpu.memory_space<vmem>>, %arg9: memref<32x32xbf16, #tpu.memory_space<vmem>>, %arg10: memref<1x32xf32, #tpu.memory_space<vmem>>, %arg11: memref<32x32xbf16, #tpu.memory_space<vmem>>, %arg12: memref<1x32xf32, #tpu.memory_space<vmem>>, %arg13: memref<32x32xbf16, #tpu.memory_space<vmem>>, %arg14: memref<1x32xf32, #tpu.memory_space<vmem>>, %arg15: memref<32x128xbf16, #tpu.memory_space<vmem>>, %arg16: memref<1x128xf32, #tpu.memory_space<vmem>>, %arg17: memref<2x8x128xf32, #tpu.memory_space<vmem>>, %arg18: memref<2x8x1xf32, #tpu.memory_space<vmem>>, %arg19: memref<2x8x128xf32, #tpu.memory_space<vmem>>, %arg20: memref<16x32xbf16, #tpu.memory_space<vmem>>, %arg21: memref<16x1xf32, #tpu.memory_space<vmem>>, %arg22: memref<16x1xf32, #tpu.memory_space<vmem>>) attributes {dimension_semantics = [#tpu.dimension_semantics<parallel>, #tpu.dimension_semantics<arbitrary>], iteration_bounds = array<i64: 2, 1>, scalar_prefetch = 0 : i64, scratch_operands = 3 : i64, tpu.core_type = #tpu.core_type<tc>, window_params = [{transform_indices = @transform_0, window_bounds = array<i64: 2, 8, 32>}, {transform_indices = @transform_1, window_bounds = array<i64: 2, 128, 32>}, {transform_indices = @transform_2, window_bounds = array<i64: 2, 128, 32>}, {pipeline_mode = #tpu.pipeline_mode<synchronous>, transform_indices = @transform_3, window_bounds = array<i64: 32, 32>}, {pipeline_mode = #tpu.pipeline_mode<synchronous>, transform_indices = @transform_4, window_bounds = array<i64: 1, 32>}, {pipeline_mode = #tpu.pipeline_mode<synchronous>, transform_indices = @transform_5, window_bounds = array<i64: 2, 96, 64>}, {pipeline_mode = #tpu.pipeline_mode<synchronous>, transform_indices = @transform_6, window_bounds = array<i64: 2, 1, 64>}, {pipeline_mode = #tpu.pipeline_mode<synchronous>, transform_indices = @transform_7, window_bounds = array<i64: 32, 32>}, {pipeline_mode = #tpu.pipeline_mode<synchronous>, transform_indices = @transform_8, window_bounds = array<i64: 1, 32>}, {pipeline_mode = #tpu.pipeline_mode<synchronous>, transform_indices = @transform_9, window_bounds = array<i64: 32, 32>}, {pipeline_mode = #tpu.pipeline_mode<synchronous>, transform_indices = @transform_10, window_bounds = array<i64: 1, 32>}, {pipeline_mode = #tpu.pipeline_mode<synchronous>, transform_indices = @transform_11, window_bounds = array<i64: 32, 32>}, {pipeline_mode = #tpu.pipeline_mode<synchronous>, transform_indices = @transform_12, window_bounds = array<i64: 1, 32>}, {transform_indices = @transform_13, window_bounds = array<i64: 32, 128>}, {transform_indices = @transform_14, window_bounds = array<i64: 1, 128>}, {transform_indices = @transform_15, window_bounds = array<i64: 2, 8, 128>}, {transform_indices = @transform_16, window_bounds = array<i64: 2, 8, 1>}, {transform_indices = @transform_17, window_bounds = array<i64: 2, 8, 128>}]} {
    %c0_i32 = arith.constant 0 : i32
    %0 = arith.cmpi eq, %arg1, %c0_i32 : i32
    %1 = arith.extui %0 : i1 to i32
    %cst = arith.constant 0.707106769 : f32
    %c0_i32_0 = arith.constant 0 : i32
    %2 = arith.cmpi ne, %1, %c0_i32_0 : i32
    scf.if %2 {
      %c0_22 = arith.constant 0 : index
      %c0_23 = arith.constant 0 : index
      %c0_24 = arith.constant 0 : index
      %30 = vector.load %arg2[%c0_22, %c0_23, %c0_24] : memref<2x8x32xf32, #tpu.memory_space<vmem>>, vector<2x8x32xf32>
      %31 = vector.shape_cast %30 : vector<2x8x32xf32> to vector<16x32xf32>
      %c0_25 = arith.constant 0 : index
      %c0_26 = arith.constant 0 : index
      %c0_27 = arith.constant 0 : index
      %32 = vector.load %arg3[%c0_25, %c0_26, %c0_27] : memref<2x128x32xbf16, #tpu.memory_space<vmem>>, vector<2x128x32xbf16>
      %c0_28 = arith.constant 0 : index
      %c0_29 = arith.constant 0 : index
      %c0_30 = arith.constant 0 : index
      %33 = vector.load %arg4[%c0_28, %c0_29, %c0_30] : memref<2x128x32xbf16, #tpu.memory_space<vmem>>, vector<2x128x32xbf16>
      %c0_31 = arith.constant 0 : index
      %c0_32 = arith.constant 0 : index
      %34 = vector.load %arg5[%c0_31, %c0_32] : memref<32x32xbf16, #tpu.memory_space<vmem>>, vector<32x32xbf16>
      %c0_33 = arith.constant 0 : index
      %c0_34 = arith.constant 0 : index
      %35 = vector.load %arg9[%c0_33, %c0_34] : memref<32x32xbf16, #tpu.memory_space<vmem>>, vector<32x32xbf16>
      %c0_35 = arith.constant 0 : index
      %c0_36 = arith.constant 0 : index
      %36 = vector.load %arg11[%c0_35, %c0_36] : memref<32x32xbf16, #tpu.memory_space<vmem>>, vector<32x32xbf16>
      %c0_37 = arith.constant 0 : index
      %c0_38 = arith.constant 0 : index
      %37 = vector.load %arg13[%c0_37, %c0_38] : memref<32x32xbf16, #tpu.memory_space<vmem>>, vector<32x32xbf16>
      %c0_39 = arith.constant 0 : index
      %c0_40 = arith.constant 0 : index
      %38 = vector.load %arg10[%c0_39, %c0_40] : memref<1x32xf32, #tpu.memory_space<vmem>>, vector<1x32xf32>
      %39 = vector.shape_cast %38 : vector<1x32xf32> to vector<1x32xf32>
      %40 = vector.broadcast %39 : vector<1x32xf32> to vector<16x32xf32>
      %c0_41 = arith.constant 0 : index
      %c0_42 = arith.constant 0 : index
      %41 = vector.load %arg12[%c0_41, %c0_42] : memref<1x32xf32, #tpu.memory_space<vmem>>, vector<1x32xf32>
      %42 = vector.shape_cast %41 : vector<1x32xf32> to vector<1x32xf32>
      %43 = vector.broadcast %42 : vector<1x32xf32> to vector<16x32xf32>
      %44 = arith.truncf %31 : vector<16x32xf32> to vector<16x32xbf16>
      %cst_43 = arith.constant dense<0.000000e+00> : vector<16x32xf32>
      %45 = tpu.matmul %44, %34, %cst_43 {dimension_numbers = #tpu.dot_dimension_numbers<[1], [0], [0], [1], [0, 0, 1, 1], [], []>} : vector<16x32xbf16>, vector<32x32xbf16>, vector<16x32xf32> -> vector<16x32xf32>
      %c0_44 = arith.constant 0 : index
      %c0_45 = arith.constant 0 : index
      %46 = vector.load %arg6[%c0_44, %c0_45] : memref<1x32xf32, #tpu.memory_space<vmem>>, vector<1x32xf32>
      %47 = vector.broadcast %46 : vector<1x32xf32> to vector<16x32xf32>
      %48 = arith.addf %45, %47 : vector<16x32xf32>
      %cst_46 = arith.constant 1.000000e+00 : f32
      %49 = vector.broadcast %cst_46 : f32 to vector<2x2x32xf32>
      %50 = tpu.iota {dimensions = array<i32: 2>} : vector<1x8x128xi32>
      %c16_i32 = arith.constant 16 : i32
      %51 = vector.broadcast %c16_i32 : i32 to vector<1x8x128xi32>
      %52 = arith.cmpi sge, %50, %51 : vector<1x8x128xi32>
      %53 = vector.shape_cast %48 : vector<16x32xf32> to vector<2x8x32xf32>
      %54 = tpu.concatenate %49, %53 in 1 : vector<2x2x32xf32>, vector<2x8x32xf32> -> vector<2x10x32xf32>
      %55 = vector.extract_strided_slice %54 {offsets = [0, 0, 0], sizes = [2, 8, 32], strides = [1, 1, 1]} : vector<2x10x32xf32> to vector<2x8x32xf32>
      %56 = vector.extract_strided_slice %54 {offsets = [0, 1, 0], sizes = [2, 8, 32], strides = [1, 1, 1]} : vector<2x10x32xf32> to vector<2x8x32xf32>
      %57 = vector.extract_strided_slice %54 {offsets = [0, 2, 0], sizes = [2, 8, 32], strides = [1, 1, 1]} : vector<2x10x32xf32> to vector<2x8x32xf32>
      %58 = tpu.concatenate %55, %56, %57 in 2 : vector<2x8x32xf32>, vector<2x8x32xf32>, vector<2x8x32xf32> -> vector<2x8x96xf32>
      %59 = vector.shape_cast %58 : vector<2x8x96xf32> to vector<16x96xf32>
      %c0_47 = arith.constant 0 : index
      %c0_48 = arith.constant 0 : index
      %c0_49 = arith.constant 0 : index
      %60 = vector.load %arg7[%c0_47, %c0_48, %c0_49] : memref<2x96x64xbf16, #tpu.memory_space<vmem>>, vector<1x96x64xbf16>
      %61 = vector.shape_cast %60 : vector<1x96x64xbf16> to vector<96x64xbf16>
      %62 = arith.truncf %59 : vector<16x96xf32> to vector<16x96xbf16>
      %cst_50 = arith.constant dense<0.000000e+00> : vector<16x64xf32>
      %63 = tpu.matmul %62, %61, %cst_50 {dimension_numbers = #tpu.dot_dimension_numbers<[1], [0], [0], [1], [0, 0, 1, 1], [], []>} : vector<16x96xbf16>, vector<96x64xbf16>, vector<16x64xf32> -> vector<16x64xf32>
      %c0_51 = arith.constant 0 : index
      %c0_52 = arith.constant 0 : index
      %c0_53 = arith.constant 0 : index
      %64 = vector.load %arg8[%c0_51, %c0_52, %c0_53] : memref<2x1x64xf32, #tpu.memory_space<vmem>>, vector<1x1x64xf32>
      %65 = vector.shape_cast %64 : vector<1x1x64xf32> to vector<1x64xf32>
      %66 = vector.broadcast %65 : vector<1x64xf32> to vector<16x64xf32>
      %67 = arith.addf %63, %66 : vector<16x64xf32>
      %68 = vector.extract_strided_slice %67 {offsets = [0, 0], sizes = [16, 32], strides = [1, 1]} : vector<16x64xf32> to vector<16x32xf32>
      %69 = vector.extract_strided_slice %67 {offsets = [0, 32], sizes = [16, 32], strides = [1, 1]} : vector<16x64xf32> to vector<16x32xf32>
      %70 = arith.negf %69 : vector<16x32xf32>
      %71 = math.exp %70 : vector<16x32xf32>
      %cst_54 = arith.constant 1.000000e+00 : f32
      %72 = vector.broadcast %cst_54 : f32 to vector<16x32xf32>
      %73 = arith.addf %72, %71 : vector<16x32xf32>
      %74 = arith.divf %72, %73 : vector<16x32xf32>
      %75 = arith.mulf %68, %74 : vector<16x32xf32>
      %76 = arith.truncf %75 : vector<16x32xf32> to vector<16x32xbf16>
      %cst_55 = arith.constant dense<0.000000e+00> : vector<16x32xf32>
      %77 = tpu.matmul %76, %35, %cst_55 {dimension_numbers = #tpu.dot_dimension_numbers<[1], [0], [0], [1], [0, 0, 1, 1], [], []>} : vector<16x32xbf16>, vector<32x32xbf16>, vector<16x32xf32> -> vector<16x32xf32>
      %78 = arith.addf %77, %40 : vector<16x32xf32>
      %79 = arith.addf %78, %31 : vector<16x32xf32>
      %80 = vector.broadcast %cst : f32 to vector<16x32xf32>
      %81 = arith.mulf %79, %80 : vector<16x32xf32>
      %82 = vector.shape_cast %81 : vector<16x32xf32> to vector<2x8x32xf32>
      %83 = arith.truncf %82 : vector<2x8x32xf32> to vector<2x8x32xbf16>
      %cst_56 = arith.constant dense<0.000000e+00> : vector<2x8x128xf32>
      %84 = tpu.matmul %83, %32, %cst_56 {dimension_numbers = #tpu.dot_dimension_numbers<[2], [2], [1], [1], [0, 0, 0, 1, 1, 1], [0], [0]>} : vector<2x8x32xbf16>, vector<2x128x32xbf16>, vector<2x8x128xf32> -> vector<2x8x128xf32>
      %cst_57 = arith.constant -1.000000e+09 : f32
      %85 = vector.shape_cast %52 : vector<1x8x128xi1> to vector<1x8x128xi1>
      %86 = vector.broadcast %85 : vector<1x8x128xi1> to vector<2x8x128xi1>
      %87 = vector.broadcast %cst_57 : f32 to vector<2x8x128xf32>
      %88 = arith.select %86, %87, %84 : vector<2x8x128xi1>, vector<2x8x128xf32>
      %cst_58 = arith.constant dense<0xFF800000> : vector<2x8xf32>
      %89 = vector.multi_reduction <maximumf>, %88, %cst_58 [2] : vector<2x8x128xf32> to vector<2x8xf32>
      %90 = vector.shape_cast %89 : vector<2x8xf32> to vector<2x8x1xf32>
      %91 = vector.broadcast %90 : vector<2x8x1xf32> to vector<2x8x128xf32>
      %92 = arith.subf %88, %91 : vector<2x8x128xf32>
      %93 = math.exp %92 : vector<2x8x128xf32>
      %cst_59 = arith.constant dense<0.000000e+00> : vector<2x8xf32>
      %94 = vector.multi_reduction <add>, %93, %cst_59 [2] : vector<2x8x128xf32> to vector<2x8xf32>
      %95 = vector.shape_cast %94 : vector<2x8xf32> to vector<2x8x1xf32>
      %96 = tpu.reciprocal %95 {approx = true} : vector<2x8x1xf32> -> vector<2x8x1xf32>
      %97 = vector.broadcast %96 : vector<2x8x1xf32> to vector<2x8x128xf32>
      %98 = arith.mulf %93, %97 : vector<2x8x128xf32>
      %99 = arith.truncf %98 : vector<2x8x128xf32> to vector<2x8x128xbf16>
      %cst_60 = arith.constant dense<0.000000e+00> : vector<2x8x32xf32>
      %100 = tpu.matmul %99, %33, %cst_60 {dimension_numbers = #tpu.dot_dimension_numbers<[2], [1], [1], [2], [0, 0, 0, 1, 1, 2], [0], [0]>} : vector<2x8x128xbf16>, vector<2x128x32xbf16>, vector<2x8x32xf32> -> vector<2x8x32xf32>
      %101 = vector.shape_cast %100 : vector<2x8x32xf32> to vector<16x32xf32>
      %102 = arith.truncf %101 : vector<16x32xf32> to vector<16x32xbf16>
      %cst_61 = arith.constant dense<0.000000e+00> : vector<16x32xf32>
      %103 = tpu.matmul %102, %36, %cst_61 {dimension_numbers = #tpu.dot_dimension_numbers<[1], [0], [0], [1], [0, 0, 1, 1], [], []>} : vector<16x32xbf16>, vector<32x32xbf16>, vector<16x32xf32> -> vector<16x32xf32>
      %104 = arith.addf %103, %43 : vector<16x32xf32>
      %105 = arith.addf %75, %104 : vector<16x32xf32>
      %106 = vector.broadcast %cst : f32 to vector<16x32xf32>
      %107 = arith.mulf %105, %106 : vector<16x32xf32>
      %108 = arith.addf %107, %48 : vector<16x32xf32>
      %109 = vector.broadcast %cst : f32 to vector<16x32xf32>
      %110 = arith.mulf %108, %109 : vector<16x32xf32>
      %111 = vector.shape_cast %110 : vector<16x32xf32> to vector<2x8x32xf32>
      %112 = tpu.concatenate %49, %111 in 1 : vector<2x2x32xf32>, vector<2x8x32xf32> -> vector<2x10x32xf32>
      %113 = vector.extract_strided_slice %112 {offsets = [0, 0, 0], sizes = [2, 8, 32], strides = [1, 1, 1]} : vector<2x10x32xf32> to vector<2x8x32xf32>
      %114 = vector.extract_strided_slice %112 {offsets = [0, 1, 0], sizes = [2, 8, 32], strides = [1, 1, 1]} : vector<2x10x32xf32> to vector<2x8x32xf32>
      %115 = vector.extract_strided_slice %112 {offsets = [0, 2, 0], sizes = [2, 8, 32], strides = [1, 1, 1]} : vector<2x10x32xf32> to vector<2x8x32xf32>
      %116 = tpu.concatenate %113, %114, %115 in 2 : vector<2x8x32xf32>, vector<2x8x32xf32>, vector<2x8x32xf32> -> vector<2x8x96xf32>
      %117 = vector.shape_cast %116 : vector<2x8x96xf32> to vector<16x96xf32>
      %c1 = arith.constant 1 : index
      %c0_62 = arith.constant 0 : index
      %c0_63 = arith.constant 0 : index
      %118 = vector.load %arg7[%c1, %c0_62, %c0_63] : memref<2x96x64xbf16, #tpu.memory_space<vmem>>, vector<1x96x64xbf16>
      %119 = vector.shape_cast %118 : vector<1x96x64xbf16> to vector<96x64xbf16>
      %120 = arith.truncf %117 : vector<16x96xf32> to vector<16x96xbf16>
      %cst_64 = arith.constant dense<0.000000e+00> : vector<16x64xf32>
      %121 = tpu.matmul %120, %119, %cst_64 {dimension_numbers = #tpu.dot_dimension_numbers<[1], [0], [0], [1], [0, 0, 1, 1], [], []>} : vector<16x96xbf16>, vector<96x64xbf16>, vector<16x64xf32> -> vector<16x64xf32>
      %c1_65 = arith.constant 1 : index
      %c0_66 = arith.constant 0 : index
      %c0_67 = arith.constant 0 : index
      %122 = vector.load %arg8[%c1_65, %c0_66, %c0_67] : memref<2x1x64xf32, #tpu.memory_space<vmem>>, vector<1x1x64xf32>
      %123 = vector.shape_cast %122 : vector<1x1x64xf32> to vector<1x64xf32>
      %124 = vector.broadcast %123 : vector<1x64xf32> to vector<16x64xf32>
      %125 = arith.addf %121, %124 : vector<16x64xf32>
      %126 = vector.extract_strided_slice %125 {offsets = [0, 0], sizes = [16, 32], strides = [1, 1]} : vector<16x64xf32> to vector<16x32xf32>
      %127 = vector.extract_strided_slice %125 {offsets = [0, 32], sizes = [16, 32], strides = [1, 1]} : vector<16x64xf32> to vector<16x32xf32>
      %128 = arith.negf %127 : vector<16x32xf32>
      %129 = math.exp %128 : vector<16x32xf32>
      %cst_68 = arith.constant 1.000000e+00 : f32
      %130 = vector.broadcast %cst_68 : f32 to vector<16x32xf32>
      %131 = arith.addf %130, %129 : vector<16x32xf32>
      %132 = arith.divf %130, %131 : vector<16x32xf32>
      %133 = arith.mulf %126, %132 : vector<16x32xf32>
      %134 = arith.truncf %133 : vector<16x32xf32> to vector<16x32xbf16>
      %cst_69 = arith.constant dense<0.000000e+00> : vector<16x32xf32>
      %135 = tpu.matmul %134, %35, %cst_69 {dimension_numbers = #tpu.dot_dimension_numbers<[1], [0], [0], [1], [0, 0, 1, 1], [], []>} : vector<16x32xbf16>, vector<32x32xbf16>, vector<16x32xf32> -> vector<16x32xf32>
      %136 = arith.addf %135, %40 : vector<16x32xf32>
      %137 = arith.addf %136, %31 : vector<16x32xf32>
      %138 = vector.broadcast %cst : f32 to vector<16x32xf32>
      %139 = arith.mulf %137, %138 : vector<16x32xf32>
      %140 = vector.shape_cast %139 : vector<16x32xf32> to vector<2x8x32xf32>
      %141 = arith.truncf %140 : vector<2x8x32xf32> to vector<2x8x32xbf16>
      %cst_70 = arith.constant dense<0.000000e+00> : vector<2x8x128xf32>
      %142 = tpu.matmul %141, %32, %cst_70 {dimension_numbers = #tpu.dot_dimension_numbers<[2], [2], [1], [1], [0, 0, 0, 1, 1, 1], [0], [0]>} : vector<2x8x32xbf16>, vector<2x128x32xbf16>, vector<2x8x128xf32> -> vector<2x8x128xf32>
      %cst_71 = arith.constant -1.000000e+09 : f32
      %143 = vector.shape_cast %52 : vector<1x8x128xi1> to vector<1x8x128xi1>
      %144 = vector.broadcast %143 : vector<1x8x128xi1> to vector<2x8x128xi1>
      %145 = vector.broadcast %cst_71 : f32 to vector<2x8x128xf32>
      %146 = arith.select %144, %145, %142 : vector<2x8x128xi1>, vector<2x8x128xf32>
      %cst_72 = arith.constant dense<0xFF800000> : vector<2x8xf32>
      %147 = vector.multi_reduction <maximumf>, %146, %cst_72 [2] : vector<2x8x128xf32> to vector<2x8xf32>
      %148 = vector.shape_cast %147 : vector<2x8xf32> to vector<2x8x1xf32>
      %149 = vector.broadcast %148 : vector<2x8x1xf32> to vector<2x8x128xf32>
      %150 = arith.subf %146, %149 : vector<2x8x128xf32>
      %151 = math.exp %150 : vector<2x8x128xf32>
      %cst_73 = arith.constant dense<0.000000e+00> : vector<2x8xf32>
      %152 = vector.multi_reduction <add>, %151, %cst_73 [2] : vector<2x8x128xf32> to vector<2x8xf32>
      %153 = vector.shape_cast %152 : vector<2x8xf32> to vector<2x8x1xf32>
      %154 = tpu.reciprocal %153 {approx = true} : vector<2x8x1xf32> -> vector<2x8x1xf32>
      %155 = vector.broadcast %154 : vector<2x8x1xf32> to vector<2x8x128xf32>
      %156 = arith.mulf %151, %155 : vector<2x8x128xf32>
      %157 = arith.truncf %156 : vector<2x8x128xf32> to vector<2x8x128xbf16>
      %cst_74 = arith.constant dense<0.000000e+00> : vector<2x8x32xf32>
      %158 = tpu.matmul %157, %33, %cst_74 {dimension_numbers = #tpu.dot_dimension_numbers<[2], [1], [1], [2], [0, 0, 0, 1, 1, 2], [0], [0]>} : vector<2x8x128xbf16>, vector<2x128x32xbf16>, vector<2x8x32xf32> -> vector<2x8x32xf32>
      %159 = vector.shape_cast %158 : vector<2x8x32xf32> to vector<16x32xf32>
      %160 = arith.truncf %159 : vector<16x32xf32> to vector<16x32xbf16>
      %cst_75 = arith.constant dense<0.000000e+00> : vector<16x32xf32>
      %161 = tpu.matmul %160, %36, %cst_75 {dimension_numbers = #tpu.dot_dimension_numbers<[1], [0], [0], [1], [0, 0, 1, 1], [], []>} : vector<16x32xbf16>, vector<32x32xbf16>, vector<16x32xf32> -> vector<16x32xf32>
      %162 = arith.addf %161, %43 : vector<16x32xf32>
      %163 = arith.addf %133, %162 : vector<16x32xf32>
      %164 = vector.broadcast %cst : f32 to vector<16x32xf32>
      %165 = arith.mulf %163, %164 : vector<16x32xf32>
      %166 = arith.addf %165, %110 : vector<16x32xf32>
      %167 = vector.broadcast %cst : f32 to vector<16x32xf32>
      %168 = arith.mulf %166, %167 : vector<16x32xf32>
      %169 = arith.truncf %168 : vector<16x32xf32> to vector<16x32xbf16>
      %cst_76 = arith.constant dense<0.000000e+00> : vector<16x32xf32>
      %170 = tpu.matmul %169, %37, %cst_76 {dimension_numbers = #tpu.dot_dimension_numbers<[1], [0], [0], [1], [0, 0, 1, 1], [], []>} : vector<16x32xbf16>, vector<32x32xbf16>, vector<16x32xf32> -> vector<16x32xf32>
      %c0_77 = arith.constant 0 : index
      %c0_78 = arith.constant 0 : index
      %171 = vector.load %arg14[%c0_77, %c0_78] : memref<1x32xf32, #tpu.memory_space<vmem>>, vector<1x32xf32>
      %172 = vector.broadcast %171 : vector<1x32xf32> to vector<16x32xf32>
      %173 = arith.addf %170, %172 : vector<16x32xf32>
      %174 = arith.truncf %173 : vector<16x32xf32> to vector<16x32xbf16>
      %c0_79 = arith.constant 0 : index
      %c0_80 = arith.constant 0 : index
      %175 = vector.load %arg20[%c0_79, %c0_80] : memref<16x32xbf16, #tpu.memory_space<vmem>>, vector<16x32xbf16>
      tpu.vector_store %arg20[%c0_79, %c0_80], %174 {strides = array<i32>} : memref<16x32xbf16, #tpu.memory_space<vmem>>, vector<16x32xbf16>,
      %c0_81 = arith.constant 0 : index
      %c0_82 = arith.constant 0 : index
      %c0_83 = arith.constant 0 : index
      %176 = vector.load %arg19[%c0_81, %c0_82, %c0_83] : memref<2x8x128xf32, #tpu.memory_space<vmem>>, vector<2x8x128xf32>
      tpu.vector_store %arg19[%c0_81, %c0_82, %c0_83], %156 {strides = array<i32>} : memref<2x8x128xf32, #tpu.memory_space<vmem>>, vector<2x8x128xf32>,
      %cst_84 = arith.constant 0xFF800000 : f32
      %177 = vector.broadcast %cst_84 : f32 to vector<16x1xf32>
      %c0_85 = arith.constant 0 : index
      %c0_86 = arith.constant 0 : index
      %178 = vector.load %arg21[%c0_85, %c0_86] : memref<16x1xf32, #tpu.memory_space<vmem>>, vector<16x1xf32>
      tpu.vector_store %arg21[%c0_85, %c0_86], %177 {strides = array<i32>} : memref<16x1xf32, #tpu.memory_space<vmem>>, vector<16x1xf32>,
      %cst_87 = arith.constant 0.000000e+00 : f32
      %179 = vector.broadcast %cst_87 : f32 to vector<16x1xf32>
      %c0_88 = arith.constant 0 : index
      %c0_89 = arith.constant 0 : index
      %180 = vector.load %arg22[%c0_88, %c0_89] : memref<16x1xf32, #tpu.memory_space<vmem>>, vector<16x1xf32>
      tpu.vector_store %arg22[%c0_88, %c0_89], %179 {strides = array<i32>} : memref<16x1xf32, #tpu.memory_space<vmem>>, vector<16x1xf32>,
    } else {
    }
    %c0 = arith.constant 0 : index
    %c0_1 = arith.constant 0 : index
    %3 = vector.load %arg20[%c0, %c0_1] : memref<16x32xbf16, #tpu.memory_space<vmem>>, vector<16x32xbf16>
    %c0_2 = arith.constant 0 : index
    %c0_3 = arith.constant 0 : index
    %4 = vector.load %arg15[%c0_2, %c0_3] : memref<32x128xbf16, #tpu.memory_space<vmem>>, vector<32x128xbf16>
    %cst_4 = arith.constant dense<0.000000e+00> : vector<16x128xf32>
    %5 = tpu.matmul %3, %4, %cst_4 {dimension_numbers = #tpu.dot_dimension_numbers<[1], [0], [0], [1], [0, 0, 1, 1], [], []>} : vector<16x32xbf16>, vector<32x128xbf16>, vector<16x128xf32> -> vector<16x128xf32>
    %c0_5 = arith.constant 0 : index
    %c0_6 = arith.constant 0 : index
    %6 = vector.load %arg16[%c0_5, %c0_6] : memref<1x128xf32, #tpu.memory_space<vmem>>, vector<1x128xf32>
    %7 = vector.broadcast %6 : vector<1x128xf32> to vector<16x128xf32>
    %8 = arith.addf %5, %7 : vector<16x128xf32>
    %cst_7 = arith.constant dense<0xFF800000> : vector<16xf32>
    %9 = vector.multi_reduction <maximumf>, %8, %cst_7 [1] : vector<16x128xf32> to vector<16xf32>
    %10 = vector.shape_cast %9 : vector<16xf32> to vector<16x1xf32>
    %c0_8 = arith.constant 0 : index
    %c0_9 = arith.constant 0 : index
    %11 = vector.load %arg21[%c0_8, %c0_9] : memref<16x1xf32, #tpu.memory_space<vmem>>, vector<16x1xf32>
    %12 = arith.maximumf %11, %10 : vector<16x1xf32>
    %c0_10 = arith.constant 0 : index
    %c0_11 = arith.constant 0 : index
    %13 = vector.load %arg22[%c0_10, %c0_11] : memref<16x1xf32, #tpu.memory_space<vmem>>, vector<16x1xf32>
    %14 = arith.subf %11, %12 : vector<16x1xf32>
    %15 = math.exp %14 : vector<16x1xf32>
    %16 = arith.mulf %13, %15 : vector<16x1xf32>
    %17 = vector.broadcast %12 : vector<16x1xf32> to vector<16x128xf32>
    %18 = arith.subf %8, %17 : vector<16x128xf32>
    %19 = math.exp %18 : vector<16x128xf32>
    %cst_12 = arith.constant dense<0.000000e+00> : vector<16xf32>
    %20 = vector.multi_reduction <add>, %19, %cst_12 [1] : vector<16x128xf32> to vector<16xf32>
    %21 = vector.shape_cast %20 : vector<16xf32> to vector<16x1xf32>
    %22 = arith.addf %16, %21 : vector<16x1xf32>
    %c0_13 = arith.constant 0 : index
    %c0_14 = arith.constant 0 : index
    %23 = vector.load %arg22[%c0_13, %c0_14] : memref<16x1xf32, #tpu.memory_space<vmem>>, vector<16x1xf32>
    tpu.vector_store %arg22[%c0_13, %c0_14], %22 {strides = array<i32>} : memref<16x1xf32, #tpu.memory_space<vmem>>, vector<16x1xf32>,
    %c0_15 = arith.constant 0 : index
    %c0_16 = arith.constant 0 : index
    %24 = vector.load %arg21[%c0_15, %c0_16] : memref<16x1xf32, #tpu.memory_space<vmem>>, vector<16x1xf32>
    tpu.vector_store %arg21[%c0_15, %c0_16], %12 {strides = array<i32>} : memref<16x1xf32, #tpu.memory_space<vmem>>, vector<16x1xf32>,
    %25 = vector.shape_cast %8 : vector<16x128xf32> to vector<2x8x128xf32>
    %c0_17 = arith.constant 0 : index
    %c0_18 = arith.constant 0 : index
    %c0_19 = arith.constant 0 : index
    %26 = vector.load %arg17[%c0_17, %c0_18, %c0_19] : memref<2x8x128xf32, #tpu.memory_space<vmem>>, vector<2x8x128xf32>
    tpu.vector_store %arg17[%c0_17, %c0_18, %c0_19], %25 {strides = array<i32>} : memref<2x8x128xf32, #tpu.memory_space<vmem>>, vector<2x8x128xf32>,
    %c0_i32_20 = arith.constant 0 : i32
    %27 = arith.cmpi eq, %arg1, %c0_i32_20 : i32
    %28 = arith.extui %27 : i1 to i32
    %c0_i32_21 = arith.constant 0 : i32
    %29 = arith.cmpi ne, %28, %c0_i32_21 : i32
    scf.if %29 {
      %c0_22 = arith.constant 0 : index
      %c0_23 = arith.constant 0 : index
      %30 = vector.load %arg21[%c0_22, %c0_23] : memref<16x1xf32, #tpu.memory_space<vmem>>, vector<16x1xf32>
      %c0_24 = arith.constant 0 : index
      %c0_25 = arith.constant 0 : index
      %31 = vector.load %arg22[%c0_24, %c0_25] : memref<16x1xf32, #tpu.memory_space<vmem>>, vector<16x1xf32>
      %32 = math.log %31 : vector<16x1xf32>
      %33 = arith.addf %30, %32 : vector<16x1xf32>
      %34 = vector.shape_cast %33 : vector<16x1xf32> to vector<2x8x1xf32>
      %c0_26 = arith.constant 0 : index
      %c0_27 = arith.constant 0 : index
      %c0_28 = arith.constant 0 : index
      %35 = vector.load %arg18[%c0_26, %c0_27, %c0_28] : memref<2x8x1xf32, #tpu.memory_space<vmem>>, vector<2x8x1xf32>
      tpu.vector_store %arg18[%c0_26, %c0_27, %c0_28], %34 {strides = array<i32>} : memref<2x8x1xf32, #tpu.memory_space<vmem>>, vector<2x8x1xf32>,
    } else {
    }
    return
  }
  func.func @transform_0(%arg0: i32, %arg1: i32) -> (i32, i32, i32) {
    %c0_i32 = arith.constant 0 : i32
    %c0_i32_0 = arith.constant 0 : i32
    %c0_i32_1 = arith.constant 0 : i32
    return %arg0, %c0_i32, %c0_i32_0 : i32, i32, i32
  }
  func.func @transform_1(%arg0: i32, %arg1: i32) -> (i32, i32, i32) {
    %c0_i32 = arith.constant 0 : i32
    %c0_i32_0 = arith.constant 0 : i32
    %c0_i32_1 = arith.constant 0 : i32
    return %arg0, %c0_i32, %c0_i32_0 : i32, i32, i32
  }
  func.func @transform_2(%arg0: i32, %arg1: i32) -> (i32, i32, i32) {
    %c0_i32 = arith.constant 0 : i32
    %c0_i32_0 = arith.constant 0 : i32
    %c0_i32_1 = arith.constant 0 : i32
    return %arg0, %c0_i32, %c0_i32_0 : i32, i32, i32
  }
  func.func @transform_3(%arg0: i32, %arg1: i32) -> (i32, i32) {
    %c0_i32 = arith.constant 0 : i32
    %c0_i32_0 = arith.constant 0 : i32
    %c0_i32_1 = arith.constant 0 : i32
    return %c0_i32, %c0_i32_0 : i32, i32
  }
  func.func @transform_4(%arg0: i32, %arg1: i32) -> (i32, i32) {
    %c0_i32 = arith.constant 0 : i32
    %c0_i32_0 = arith.constant 0 : i32
    %c0_i32_1 = arith.constant 0 : i32
    return %c0_i32, %c0_i32_0 : i32, i32
  }
  func.func @transform_5(%arg0: i32, %arg1: i32) -> (i32, i32, i32) {
    %c0_i32 = arith.constant 0 : i32
    %c0_i32_0 = arith.constant 0 : i32
    %c0_i32_1 = arith.constant 0 : i32
    %c0_i32_2 = arith.constant 0 : i32
    return %c0_i32, %c0_i32_0, %c0_i32_1 : i32, i32, i32
  }
  func.func @transform_6(%arg0: i32, %arg1: i32) -> (i32, i32, i32) {
    %c0_i32 = arith.constant 0 : i32
    %c0_i32_0 = arith.constant 0 : i32
    %c0_i32_1 = arith.constant 0 : i32
    %c0_i32_2 = arith.constant 0 : i32
    return %c0_i32, %c0_i32_0, %c0_i32_1 : i32, i32, i32
  }
  func.func @transform_7(%arg0: i32, %arg1: i32) -> (i32, i32) {
    %c0_i32 = arith.constant 0 : i32
    %c0_i32_0 = arith.constant 0 : i32
    %c0_i32_1 = arith.constant 0 : i32
    return %c0_i32, %c0_i32_0 : i32, i32
  }
  func.func @transform_8(%arg0: i32, %arg1: i32) -> (i32, i32) {
    %c0_i32 = arith.constant 0 : i32
    %c0_i32_0 = arith.constant 0 : i32
    %c0_i32_1 = arith.constant 0 : i32
    return %c0_i32, %c0_i32_0 : i32, i32
  }
  func.func @transform_9(%arg0: i32, %arg1: i32) -> (i32, i32) {
    %c0_i32 = arith.constant 0 : i32
    %c0_i32_0 = arith.constant 0 : i32
    %c0_i32_1 = arith.constant 0 : i32
    return %c0_i32, %c0_i32_0 : i32, i32
  }
  func.func @transform_10(%arg0: i32, %arg1: i32) -> (i32, i32) {
    %c0_i32 = arith.constant 0 : i32
    %c0_i32_0 = arith.constant 0 : i32
    %c0_i32_1 = arith.constant 0 : i32
    return %c0_i32, %c0_i32_0 : i32, i32
  }
  func.func @transform_11(%arg0: i32, %arg1: i32) -> (i32, i32) {
    %c0_i32 = arith.constant 0 : i32
    %c0_i32_0 = arith.constant 0 : i32
    %c0_i32_1 = arith.constant 0 : i32
    return %c0_i32, %c0_i32_0 : i32, i32
  }
  func.func @transform_12(%arg0: i32, %arg1: i32) -> (i32, i32) {
    %c0_i32 = arith.constant 0 : i32
    %c0_i32_0 = arith.constant 0 : i32
    %c0_i32_1 = arith.constant 0 : i32
    return %c0_i32, %c0_i32_0 : i32, i32
  }
  func.func @transform_13(%arg0: i32, %arg1: i32) -> (i32, i32) {
    %c0_i32 = arith.constant 0 : i32
    %c0_i32_0 = arith.constant 0 : i32
    return %c0_i32, %arg1 : i32, i32
  }
  func.func @transform_14(%arg0: i32, %arg1: i32) -> (i32, i32) {
    %c0_i32 = arith.constant 0 : i32
    %c0_i32_0 = arith.constant 0 : i32
    return %c0_i32, %arg1 : i32, i32
  }
  func.func @transform_15(%arg0: i32, %arg1: i32) -> (i32, i32, i32) {
    %c0_i32 = arith.constant 0 : i32
    %c0_i32_0 = arith.constant 0 : i32
    return %arg0, %c0_i32, %arg1 : i32, i32, i32
  }
  func.func @transform_16(%arg0: i32, %arg1: i32) -> (i32, i32, i32) {
    %c0_i32 = arith.constant 0 : i32
    %c0_i32_0 = arith.constant 0 : i32
    %c0_i32_1 = arith.constant 0 : i32
    return %arg0, %c0_i32, %c0_i32_0 : i32, i32, i32
  }
  func.func @transform_17(%arg0: i32, %arg1: i32) -> (i32, i32, i32) {
    %c0_i32 = arith.constant 0 : i32
    %c0_i32_0 = arith.constant 0 : i32
    %c0_i32_1 = arith.constant 0 : i32
    return %arg0, %c0_i32, %c0_i32_0 : i32, i32, i32
  }
}

</mosaic_0001>

<bundles_post_ra>
// kernel: tpu_custom_call.1
= control target key start
LH: loop header
LB: loop body
LE: loop exit
PB: predicated region body
PF: predicated region fallthrough
CT: control target
= control target key end

     0   :  { %s4055_s0 = inlined_call_operand.vmem [shape: f32[4,8,32], index: 0, kind: input, shape index: {}]   ;;  %s4056_s1 = inlined_call_operand.vmem [shape: bf16[4,128,32], index: 1, kind: input, shape index: {}]   ;;  %s4057_s2 = inlined_call_operand.vmem [shape: bf16[4,128,32], index: 2, kind: input, shape index: {}]   ;;  %s4058_s3 = inlined_call_operand.vmem [shape: bf16[32,32], index: 3, kind: input, shape index: {}]   ;;  %s4059_s4 = inlined_call_operand.vmem [shape: f32[1,32], index: 4, kind: input, shape index: {}]   ;;  %s4060_s5 = inlined_call_operand.vmem [shape: bf16[2,96,64], index: 5, kind: input, shape index: {}]   ;;  %s4061_s6 = inlined_call_operand.vmem [shape: f32[2,1,64], index: 6, kind: input, shape index: {}]   ;;  %s4062_s7 = inlined_call_operand.vmem [shape: bf16[32,32], index: 7, kind: input, shape index: {}]   ;;  %s4063_s8 = inlined_call_operand.vmem [shape: f32[1,32], index: 8, kind: input, shape index: {}]   ;;  %s4064_s9 = inlined_call_operand.vmem [shape: bf16[32,32], index: 9, kind: input, shape index: {}]   ;;  %s4065_s10 = inlined_call_operand.vmem [shape: f32[1,32], index: 10, kind: input, shape index: {}]   ;;  %s4066_s11 = inlined_call_operand.vmem [shape: bf16[32,32], index: 11, kind: input, shape index: {}]   ;;  %s4067_s12 = inlined_call_operand.vmem [shape: f32[1,32], index: 12, kind: input, shape index: {}]   ;;  %s4068_s13 = inlined_call_operand.vmem [shape: bf16[32,128], index: 13, kind: input, shape index: {}]   ;;  %s4069_s14 = inlined_call_operand.vmem [shape: f32[1,128], index: 14, kind: input, shape index: {}]   ;;  %s4070_s15 = inlined_call_operand.hbm [shape: f32[4,8,128], index: 15, kind: output, shape index: {0}]   ;;  %s4071_s16 = inlined_call_operand.vmem [shape: f32[4,8,1], index: 16, kind: output, shape index: {1}]   ;;  %s4072_s17 = inlined_call_operand.hbm [shape: f32[4,8,128], index: 17, kind: output, shape index: {2}]  }
   0x1   :  { %4082 = sst [smem:[#allocation18_spill]] %s4055_s0 }
   0x2   :  { %4083 = sst [smem:[#allocation19_spill]] %s4056_s1 }
   0x3   :  { %4084 = sst [smem:[#allocation20_spill]] %s4057_s2 }
   0x4   :  { %4085 = sst [smem:[#allocation21_spill]] %s4058_s3 }
   0x5   :  { %4086 = sst [smem:[#allocation22_spill]] %s4059_s4 }
   0x6   :  { %4087 = sst [smem:[#allocation23_spill]] %s4060_s5 }
   0x7   :  { %23 = vsyncpa [#allocation6], 0 }
   0x8   :  { %25 = vsyncpa [#allocation6 + $0x1], 0 }
   0x9   :  { %26 = vsyncpa [#allocation8], 0 }
   0xa   :  { %28 = vsyncpa [#allocation8 + $0x1], 0  ;;  %s3310_s24 = smov 0   ;;  %s3312_s25 = smov 0  }
   0xb   :  { %s3314_s26 = smov 0   ;;  %s3316_s27 = smov 0  }
   0xc   :  { %s3318_s28 = smov 0   ;;  %s3320_s29 = smov 0  }
   0xd LB: > { %4088 = sst [smem:[#allocation11_spill]] %s3187_s24  ;;  %s2429_s0 = sadd.s32 4294967295, %s3207_s29   ;;  %s3207_s29 = sphi %s3320_s29, %s34_s29   ;;  %s3203_s28 = sphi %s3318_s28, %s4113_s28   ;;  %s3199_s27 = sphi %s3316_s27, %s4112_s27   ;;  %s3195_s26 = sphi %s3314_s26, %s4111_s26   ;;  %s3191_s25 = sphi %s3312_s25, %s4115_s25   ;;  %s3187_s24 = sphi %s3310_s24, %s4114_s24  }
   0xe   : > { %4089 = sst [smem:[#allocation12_spill]] %s3195_s26  ;;  %s2430_s30 = sadd.s32 4294967294, %s3207_s29  }
   0xf   : > { %4090 = sst [smem:[#allocation13_spill]] %s3203_s28  ;;  %s46_s18 = sadd.s32 1, %s3203_s28 }
  0x10   : > { %4091 = sst [smem:[#allocation14_spill]] %s3207_s29  ;;  %s395_s19 = sadd.s32 1, %s3195_s26 }
  0x11   : > { %p48_p0 = scmp.ge.s32.totalorder %s46_s18, 2  ;;  %p405_p1 = scmp.ne.s32.totalorder %s3195_s26, %s3191_s25 }
  0x12   : > { %p406_p2 = scmp.eq.s32.totalorder %s2429_s0, 1  ;;  %p411_p3 = scmp.ne.s32.totalorder %s3191_s25, %s3187_s24 }
  0x13   : > { %s4117_s18 = smov (%p48_p0, %s46_s18), 0  ;;  %p412_p5 = scmp.eq.s32.totalorder %s2430_s30, 1 }
  0x14   : > { %4092 = sst [smem:[#allocation15_spill]] %s4117_s18  ;;  %p3350_p4 = por %p406_p2, %p405_p1 }
  0x15   : > { %s390_s20 = ssub.s32 %s3203_s28, %s4117_s18  ;;  %p2435_p6 = scmp.ge.s32.totalorder %s3207_s29, 1 }
  0x16   : > { %p393_p7 = scmp.eq.s32.totalorder %s390_s20, 0  ;;  %p3357_p8 = por %p412_p5, %p411_p3 }
  0x17   : > { %p554_p9 = scmp.lt.s32.totalorder %s3207_s29, 3 }
  0x18   : > { %s4094_s21 = scalar_select %p3357_p8, 1, 0 }
  0x19   : > { %s3363_s22 = scalar_select %p393_p7, %s3195_s26, %s395_s19  }
  0x1a   : > { %4095 = sst [smem:[#allocation16_spill]] %s4094_s21  ;;  %p555_p10 = pnand %p2435_p6, %p554_p9 }
  0x1b   : > { %4096 = sst [smem:[#allocation17_spill]] %s3363_s22  ;;  %s4097_s3 = sld [smem:[#allocation21_spill]] (!%p555_p10)  ;;  %v3209_v1 = vmov (!%p555_p10), 0.0   ;;  %vm3210_vm0 = vmmov (!%p555_p10), 0   ;;  %vm791_vm1 = vcmask (!%p555_p10), 261120   ;;  %vm845_vm2 = vcmask (!%p555_p10), 1041408  }
  0x1c   : > { %558 = sbr.rel (%p555_p10) target bundleno = 4523 (0x11ab), region = 80  ;;  %2658 = vmatprep.subr.bf16.mxu0 (!%p555_p10), %v3209_v1  ;;  %2666 = vmatprep.subr.bf16.mxu1 (!%p555_p10), %v3209_v1  ;;  %s2438_s19 = sshll.u32 (!%p555_p10), %s3199_s27, 1  ;;  %vm850_vm3 = vcmask (!%p555_p10), 1046528   ;;  %vm863_vm4 = vcmask (!%p555_p10), 1045504   ;;  %vm878_vm5 = vcmask (!%p555_p10), 523264   ;;  %vm937_vm6 = vcmask (!%p555_p10), 785408  }
  0x1d   : > { %2662 = vmatprep.mubr.msk.bf16.mxu0 (!%p555_p10), %vm3210_vm0, %v3209_v1  ;;  %p636_p11 = scmp.lt.s32.totalorder (!%p555_p10), %s2438_s19, 3  ;;  %2678 = vmatprep.mubr.msk.bf16.mxu1 (!%p555_p10), %vm3210_vm0, %v3209_v1  ;;  %s4099_s26 = sld [smem:[#allocation19_spill]] (!%p555_p10)  ;;  %v2454_v48 = vld [vmem:[%s4061_s6] ss:$0 sm:$0xff] (!%p555_p10)  ;;  %v3473_v62 = vld [vmem:[%s4062_s7 + $0x8] sm:$0xff] (!%p555_p10)   ;;  %vm2068_vm8 = vcmask (!%p555_p10), 7168  }
  0x1e   : > { %s4100_s2 = sld [smem:[#allocation20_spill]] (!%p555_p10)  ;;  %s4101_s5 = sld [smem:[#allocation23_spill]] (!%p555_p10)  ;;  %v3466_v58 = vld [vmem:[%s4062_s7] sm:$0xff] (!%p555_p10)   ;;  %2071 = vst.msk [vmem:[#allocation4] sm:$0xff] (!%p555_p10), %vm2068_vm8, %v3209_v1  ;;  %2072 = vst.msk [vmem:[#allocation4 + $0x8] sm:$0xff] (!%p555_p10), %vm2068_vm8, %v3209_v1 }
  0x1f   : > { %s4102_s4 = sld [smem:[#allocation22_spill]] (!%p555_p10)  ;;  %s3211_s20 = smov (!%p555_p10), 32  }
  0x20   : > { %s3213_s22 = smov (!%p555_p10), 96   ;;  %s3216_s29 = smov (!%p555_p10), [#allocation5]  }
  0x21   : > { %v2997_v0 = vld [vmem:[%s4097_s3] sm:$0xff] (!%p555_p10)   ;;  %v2998_v2 = vld [vmem:[%s4097_s3 + $0x8] sm:$0xff] (!%p555_p10)   ;;  %s4098_s3 = sld [smem:[#allocation18_spill]] (!%p555_p10) }
  0x22   : > { %2659 = vmatpush3.bf16.msra.mxu0 (!%p555_p10), %v2997_v0 }
  0x23   : > { %2660 = vmatprep.subr.bf16.mxu0 %v3209_v1  ;;  %s4119_s19 = smov (!%p636_p11, %s2438_s19), 3 }
  0x24   : > { %s4077_s23 = sshll.u32 %s4119_s19, 3  ;;  %s2547_s0 = sshll.u32 %s4119_s19, 6  ;;  %v2999_v6 = vld [vmem:[%s4101_s5] sm:$0xff]   ;;  %v3000_v7 = vld [vmem:[%s4101_s5 + $0x8] sm:$0xff]   ;;  %v3001_v8 = vld [vmem:[%s4101_s5 + $0x10] sm:$0xff]  }
  0x25   : > { %s3394_s21 = scalar_lea.vmem %s4099_s26, %s2547_s0  ;;  %s3410_s28 = scalar_lea.vmem %s4100_s2, %s2547_s0  ;;  %2667 = vmatpush3.bf16.msra.mxu1 %v2999_v6  ;;  %v3002_v9 = vld [vmem:[%s4101_s5 + $0x18] sm:$0xff]   ;;  %v2450_v10 = vld [vmem:[%s4102_s4] ss:$0 sm:$0xff]  ;;  %v3004_v19 = vld [vmem:[%s4101_s5 + $0x28] sm:$0xff]  }
  0x26   : > { %2661 = vmatpush3.bf16.msra.mxu0 %v2998_v2  ;;  %2668 = vmatprep.subr.bf16.mxu1 %v3209_v1  ;;  %v3003_v12 = vld [vmem:[%s4101_s5 + $0x20] sm:$0xff]   ;;  %s3212_s0 = smov 64   ;;  %v3010_v6 = vld [vmem:[%s3394_s21 + $0x48] sm:$0xff]  }
  0x27   : > { %2682 = vmatprep.subr.bf16.mxu0 %v3209_v1  ;;  %s3389_s18 = scalar_lea.vmem %s4098_s3, %s4077_s23  ;;  %v3008_v63 = vld [vmem:[%s3394_s21 + $0x40] sm:$0xff]  }
  0x28   : > { %v3397_v3 = vld [vmem:[%s3389_s18] sm:$0xff]  ;;  %v3400_v4 = vld [vmem:[%s3389_s18 + $0x8] sm:$0xff]  ;;  %v3479_v0 = vsel %vm791_vm1, %v3008_v63, 0 }
  0x29   : > { %v771_v5 = vpack.c.bf16 %v3400_v4, %v3397_v3  ;;  %2669 = vmatpush3.bf16.msra.mxu1 %v3000_v7  ;;  %v3487_v7 = vsel %vm791_vm1, %v3010_v6, 0 }
  0x2a   : > { %2670 = vmatprep.subr.bf16.mxu1 %v3209_v1 }
  0x2b   : > { %2663 = vmatmul.mubr.msk.bf16.vlgmr.msra.gmra.mrb[0].mxu0 %vm791_vm1, %v771_v5 }
  0x2c   : > { %2686 = vmatprep.mubr.msk.bf16.mxu0 %vm3210_vm0, %v3209_v1  ;;  %2683 = vmatpush3.bf16.msra.mxu0 %v3466_v58 }
  0x2d   : > { %2671 = vmatpush3.bf16.msra.mxu1 %v3001_v8  ;;  %2684 = vmatprep.subr.bf16.mxu0 %v3209_v1  ;;  %v3012_v8 = vld [vmem:[%s3394_s21 + $0x50] sm:$0xff]  }
  0x2e   : > { %2672 = vmatprep.subr.bf16.mxu1 %v3209_v1 }
  0x30   : > { %2685 = vmatpush3.bf16.msra.mxu0 %v3473_v62 }
  0x31   : > { %2673 = vmatpush3.bf16.msra.mxu1 %v3002_v9  ;;  %2690 = vmatprep.subr.bf16.mxu0 %v3209_v1  ;;  %v3493_v9 = vsel %vm791_vm1, %v3012_v8, 0 }
  0x32   : > { %2674 = vmatprep.subr.bf16.mxu1 %v3209_v1 }
  0x35   : > { %2675 = vmatpush3.bf16.msra.mxu1 %v3003_v12  ;;  %v3016_v12 = vld [vmem:[%s3394_s21 + $0x60] sm:$0xff]  }
  0x36   : > { %2676 = vmatprep.subr.bf16.mxu1 %v3209_v1 }
  0x39   : > { %2677 = vmatpush3.bf16.msra.mxu1 %v3004_v19 }
  0x3a   : > { %2710 = vmatprep.subr.bf16.mxu1 %v3209_v1 }
  0xfe   : > { %v829_v11 = vpop.f32.mrb[0].mxu0 }
  0xff   : > { %v3434_v13 = vadd.f32 %v2450_v10, %v829_v11  ;;  %v2664_v14 = vpop.f32.mrb[1].mxu0 }
 0x100   : > { %v832_v15 = vpop.f32.mrb[2].mxu0  ;;  %v3505_v14 = vsel %vm791_vm1, %v3016_v12, 0  ;;  %v3610_v12 = vld [vmem:[%s3410_s28 + $0x40] sm:$0xff]  }
 0x101   : > { %v841_v16 = vrot.slane %v3434_v13, 6  ;;  %v3437_v17 = vadd.f32 %v2450_v10, %v832_v15  ;;  %v2665_v18 = vpop.f32.mrb[3].mxu0  ;;  %v3014_v10 = vld [vmem:[%s3394_s21 + $0x58] sm:$0xff]   ;;  %v3018_v15 = vld [vmem:[%s3394_s21 + $0x68] sm:$0xff]  }
 0x102   : > { %v3499_v11 = vsel %vm791_vm1, %v3014_v10, 0  ;;  %v3020_v18 = vld [vmem:[%s3394_s21 + $0x70] sm:$0xff]   ;;  %v3607_v10 = vld [vmem:[%s3410_s28] sm:$0xff]  }
 0x103   : > { %v846_v20 = vsel %vm845_vm2, 1.0, %v841_v16  ;;  %v842_v21 = vrot.slane %v3437_v17, 6  ;;  %v852_v23 = vrot.slane %v841_v16, 1  ;;  %v865_v30 = vrot.slane %v841_v16, 2 }
 0x104   : > { %v851_v22 = vrot.slane %v846_v20, 1  ;;  %v864_v29 = vrot.slane %v846_v20, 2  ;;  %v3511_v16 = vsel %vm791_vm1, %v3018_v15, 0  ;;  %v3517_v19 = vsel %vm791_vm1, %v3020_v18, 0  ;;  %v3614_v15 = vld [vmem:[%s3410_s28 + $0x8] sm:$0xff]  }
 0x105   : > { %v847_v24 = vsel %vm845_vm2, 1.0, %v842_v21  ;;  %v855_v25 = vrot.slane %v842_v21, 1  ;;  %v868_v27 = vrot.slane %v842_v21, 2  ;;  %v3007_v21 = vld [vmem:[%s3394_s21] sm:$0xff]   ;;  %v3618_v18 = vld [vmem:[%s3410_s28 + $0x48] sm:$0xff]  }
 0x106   : > { %v867_v26 = vrot.slane %v847_v24, 2  ;;  %v854_v28 = vrot.slane %v847_v24, 1  ;;  %v853_v31 = vsel %vm850_vm3, %v851_v22, %v852_v23  ;;  %v866_v35 = vsel %vm863_vm4, %v864_v29, %v865_v30  ;;  %v3011_v29 = vld [vmem:[%s3394_s21 + $0x10] sm:$0xff]  }
 0x107   : > { %v3544_v30 = vsel %vm791_vm1, %v3011_v29, 0 }
 0x108   : > { %v856_v32 = vsel %vm850_vm3, %v854_v28, %v855_v25  ;;  %v869_v34 = vsel %vm863_vm4, %v867_v26, %v868_v27  ;;  %v3529_v26 = vsel %vm791_vm1, %v3007_v21, 0  ;;  %v3009_v27 = vld [vmem:[%s3394_s21 + $0x8] sm:$0xff]   ;;  %v3628_v21 = vld [vmem:[%s3410_s28 + $0x50] sm:$0xff]  }
 0x109   : > { %v2975_v33 = vpack.i.bf16 %v856_v32, %v853_v31  ;;  %v2980_v36 = vpack.i.bf16 %v869_v34, %v866_v35  ;;  %v3538_v28 = vsel %vm791_vm1, %v3009_v27, 0  ;;  %v3013_v31 = vld [vmem:[%s3394_s21 + $0x18] sm:$0xff]   ;;  %v3017_v35 = vld [vmem:[%s3394_s21 + $0x28] sm:$0xff]  }
 0x10a   : > { %v3550_v32 = vsel %vm791_vm1, %v3013_v31, 0 }
 0x10b   : > { %2976 = vrot.lane.b32.xlu0 %v2975_v33, %s3211_s20  ;;  %v3015_v33 = vld [vmem:[%s3394_s21 + $0x20] sm:$0xff]  }
 0x10c   : > { %v3556_v34 = vsel %vm791_vm1, %v3015_v33, 0 }
 0x10f   : > { %2981 = vrot.lane.b32.xlu0 %v2980_v36, %s3212_s0  ;;  %v3562_v36 = vsel %vm791_vm1, %v3017_v35, 0 }
 0x17d   : > { %v2977_v37 = vpop.permute.xlu0 %2976 }
 0x17e   : > { %v2979_v38 = vunpack.i.h.bf16 %v2977_v37  ;;  %v2978_v39 = vunpack.i.l.bf16 %v2977_v37  ;;  %v3019_v37 = vld [vmem:[%s3394_s21 + $0x30] sm:$0xff]  }
 0x180   : > { %v877_v43 = vsel %vm791_vm1, %v847_v24, %v2979_v38  ;;  %v876_v44 = vsel %vm791_vm1, %v846_v20, %v2978_v39  ;;  %v3568_v38 = vsel %vm791_vm1, %v3019_v37, 0  ;;  %v3021_v39 = vld [vmem:[%s3394_s21 + $0x38] sm:$0xff]  }
 0x181   : > { %v2982_v40 = vpop.permute.xlu0 %2981 }
 0x182   : > { %v2984_v41 = vunpack.i.h.bf16 %v2982_v40  ;;  %v2983_v42 = vunpack.i.l.bf16 %v2982_v40  ;;  %v3574_v40 = vsel %vm791_vm1, %v3021_v39, 0 }
 0x184   : > { %v879_v45 = vsel %vm878_vm5, %v876_v44, %v2983_v42  ;;  %v880_v46 = vsel %vm878_vm5, %v877_v43, %v2984_v41  ;;  %v3022_v41 = vld [vmem:[%s3394_s21 + $0x78] sm:$0xff]   ;;  %v3587_v43 = vld [vmem:[%s4063_s8] ss:$0 sm:$0xff]  ;;  %s4081_s21 = sshll.u32 %s3199_s27, 8 }
 0x185   : > { %v893_v47 = vpack.c.bf16 %v880_v46, %v879_v45  ;;  %v3579_v42 = vsel %vm791_vm1, %v3022_v41, 0  ;;  %v3642_v41 = vld [vmem:[%s3410_s28 + $0x20] sm:$0xff]  }
 0x187   : > { %2679 = vmatmul.mubr.msk.bf16.vlgmr.msra.gmra.mrb[0].mxu1 %vm937_vm6, %v893_v47 }
 0x188   : > { %2726 = vmatprep.mubr.msk.bf16.mxu1 %vm3210_vm0, %v3209_v1  ;;  %2711 = vmatpush3.bf16.xpose.msra.mxu1 %v3479_v0 }
 0x189   : > { %2712 = vmatprep.subr.bf16.mxu1 %v3209_v1 }
 0x190   : > { %2713 = vmatpush3.bf16.xpose.msra.mxu1 %v3487_v7 }
 0x191   : > { %2714 = vmatprep.subr.bf16.mxu1 %v3209_v1 }
 0x198   : > { %2715 = vmatpush3.bf16.xpose.msra.mxu1 %v3493_v9 }
 0x199   : > { %2716 = vmatprep.subr.bf16.mxu1 %v3209_v1 }
 0x1a0   : > { %2717 = vmatpush3.bf16.xpose.msra.mxu1 %v3499_v11 }
 0x1a1   : > { %2718 = vmatprep.subr.bf16.mxu1 %v3209_v1 }
 0x1a8   : > { %2719 = vmatpush3.bf16.xpose.msra.mxu1 %v3505_v14 }
 0x1a9   : > { %2720 = vmatprep.subr.bf16.mxu1 %v3209_v1 }
 0x1b0   : > { %2721 = vmatpush3.bf16.xpose.msra.mxu1 %v3511_v16 }
 0x1b1   : > { %2722 = vmatprep.subr.bf16.mxu1 %v3209_v1 }
 0x1b8   : > { %2723 = vmatpush3.bf16.xpose.msra.mxu1 %v3517_v19 }
 0x1b9   : > { %2724 = vmatprep.subr.bf16.mxu1 %v3209_v1 }
 0x1c0   : > { %2725 = vmatpush3.bf16.xpose.msra.mxu1 %v3579_v42 }
 0x1c1   : > { %2750 = vmatprep.subr.bf16.mxu1 %v3209_v1 }
 0x25a   : > { %v975_v49 = vpop.f32.mrb[0].mxu1 }
 0x25b   : > { %v976_v50 = vadd.f32 %v2454_v48, %v975_v49  ;;  %v2680_v51 = vpop.f32.mrb[1].mxu1 }
 0x25c   : > { %v978_v52 = vpop.f32.mrb[2].mxu1 }
 0x25d   : > { %v2462_v53 = vmul.f32 -1.442695, %v976_v50  ;;  %v979_v54 = vadd.f32 %v2454_v48, %v978_v52  ;;  %v2681_v55 = vpop.f32.mrb[3].mxu1 }
 0x25f   : > { %3051 = vpow2.f32 %v2462_v53  ;;  %v2463_v56 = vmul.f32 -1.442695, %v979_v54 }
 0x261   : > { %3053 = vpow2.f32 %v2463_v56 }
 0x269   : > { %v3052_v57 = vpop.eup %3051 }
 0x26a   : > { %v988_v59 = vadd.f32 1.0, %v3052_v57 }
 0x26b   : > { %v3054_v60 = vpop.eup %3053 }
 0x26c   : > { %3055 = vrcp.f32 %v988_v59  ;;  %v989_v61 = vadd.f32 1.0, %v3054_v60 }
 0x26e   : > { %3057 = vrcp.f32 %v989_v61 }
 0x276   : > { %v3056_v2 = vpop.eup %3055 }
 0x277   : > { %996 = vrot.lane.b32.xlu1 %v3056_v2, %s3213_s22 }
 0x278   : > { %v3058_v5 = vpop.eup %3057 }
 0x27b   : > { %998 = vrot.lane.b32.xlu1 %v3058_v5, %s3213_s22 }
 0x2e9   : > { %v997_v20 = vpop.permute.xlu1 %996 }
 0x2ea   : > { %v3522_v23 = vmul.f32 %v997_v20, %v976_v50  ;;  %v3624_v20 = vld [vmem:[%s3410_s28 + $0x10] sm:$0xff]  }
 0x2ed   : > { %v999_v22 = vpop.permute.xlu1 %998 }
 0x2ee   : > { %v3524_v24 = vmul.f32 %v999_v22, %v979_v54  ;;  %v3634_v22 = vld [vmem:[%s3410_s28 + $0x18] sm:$0xff]  }
 0x2f0   : > { %v1004_v25 = vpack.c.bf16 %v3524_v24, %v3522_v23 }
 0x2f2   : > { %2687 = vmatmul.mubr.msk.bf16.vlgmr.msra.gmra.mrb[4].mxu0 %vm791_vm1, %v1004_v25 }
 0x2f3   : > { %2691 = vmatpush3.bf16.xpose.msra.mxu0 %v3529_v26  ;;  %2706 = vmatprep.mubr.msk.bf16.mxu0 %vm3210_vm0, %v3209_v1 }
 0x2f4   : > { %2692 = vmatprep.subr.bf16.mxu0 %v3209_v1 }
 0x2fb   : > { %2693 = vmatpush3.bf16.xpose.msra.mxu0 %v3538_v28 }
 0x2fc   : > { %2694 = vmatprep.subr.bf16.mxu0 %v3209_v1 }
 0x303   : > { %2695 = vmatpush3.bf16.xpose.msra.mxu0 %v3544_v30 }
 0x304   : > { %2696 = vmatprep.subr.bf16.mxu0 %v3209_v1 }
 0x30b   : > { %2697 = vmatpush3.bf16.xpose.msra.mxu0 %v3550_v32 }
 0x30c   : > { %2698 = vmatprep.subr.bf16.mxu0 %v3209_v1 }
 0x313   : > { %2699 = vmatpush3.bf16.xpose.msra.mxu0 %v3556_v34 }
 0x314   : > { %2700 = vmatprep.subr.bf16.mxu0 %v3209_v1 }
 0x31b   : > { %2701 = vmatpush3.bf16.xpose.msra.mxu0 %v3562_v36 }
 0x31c   : > { %2702 = vmatprep.subr.bf16.mxu0 %v3209_v1 }
 0x323   : > { %2703 = vmatpush3.bf16.xpose.msra.mxu0 %v3568_v38 }
 0x324   : > { %2704 = vmatprep.subr.bf16.mxu0 %v3209_v1 }
 0x32b   : > { %2705 = vmatpush3.bf16.xpose.msra.mxu0 %v3574_v40 }
 0x32c   : > { %2730 = vmatprep.subr.bf16.mxu0 %v3209_v1 }
 0x3c5   : > { %v1054_v44 = vpop.f32.mrb[4].mxu0 }
 0x3c6   : > { %v1055_v45 = vadd.f32 %v3587_v43, %v1054_v44  ;;  %v2688_v46 = vpop.f32.mrb[5].mxu0  ;;  %v3645_v44 = vld [vmem:[%s3410_s28 + $0x58] sm:$0xff]  }
 0x3c7   : > { %v1057_v47 = vpop.f32.mrb[6].mxu0  ;;  %v3655_v46 = vld [vmem:[%s3410_s28 + $0x60] sm:$0xff]  }
 0x3c8   : > { %v1061_v48 = vadd.f32 %v1055_v45, %v3397_v3  ;;  %v1058_v49 = vadd.f32 %v3587_v43, %v1057_v47  ;;  %v2689_v50 = vpop.f32.mrb[7].mxu0  ;;  %v836_v3 = vlaneseq  ;;  %v3652_v45 = vld [vmem:[%s3410_s28 + $0x28] sm:$0xff]   ;;  %v3660_v47 = vld [vmem:[%s3410_s28 + $0x30] sm:$0xff]  }
 0x3c9   : > { %v3673_v50 = vld [vmem:[%s3410_s28 + $0x70] sm:$0xff]  }
 0x3ca   : > { %v1063_v51 = vmul.f32 0.70710677, %v1061_v48  ;;  %v1062_v52 = vadd.f32 %v1058_v49, %v3400_v4  ;;  %v3599_v56 = vand.u32 127, %v836_v3  ;;  %v3663_v48 = vld [vmem:[%s3410_s28 + $0x68] sm:$0xff]   ;;  %v3670_v49 = vld [vmem:[%s3410_s28 + $0x38] sm:$0xff]   ;;  %v3689_v3 = vld [vmem:[%s4064_s9] sm:$0xff]  }
 0x3cc   : > { %v1065_v53 = vpack.c.bf16 %v1063_v51, %v1063_v51  ;;  %v1064_v54 = vmul.f32 0.70710677, %v1062_v52  ;;  %vm838_vm7 = vcmp.ge.s32.totalorder %v3599_v56, 16  ;;  %v3682_v51 = vld [vmem:[%s3410_s28 + $0x78] sm:$0xff]  }
 0x3ce   : > { %v1066_v55 = vpack.c.bf16 %v1064_v54, %v1064_v54  ;;  %2707 = vmatmul.mubr.msk.bf16.vlgmr.msra.gmra.mrb[8].mxu0 %vm791_vm1, %v1065_v53 }
 0x3cf   : > { %2746 = vmatprep.mubr.msk.bf16.mxu0 %vm3210_vm0, %v3209_v1  ;;  %2731 = vmatpush3.bf16.msra.mxu0 %v3607_v10 }
 0x3d0   : > { %2727 = vmatmul.mubr.msk.bf16.vlgmr.msra.gmra.mrb[4].mxu1 %vm791_vm1, %v1066_v55  ;;  %2732 = vmatprep.subr.bf16.mxu0 %v3209_v1 }
 0x3d1   : > { %2766 = vmatprep.mubr.msk.bf16.mxu1 %vm3210_vm0, %v3209_v1  ;;  %2751 = vmatpush3.bf16.msra.mxu1 %v3610_v12 }
 0x3d2   : > { %2752 = vmatprep.subr.bf16.mxu1 %v3209_v1 }
 0x3d3   : > { %2733 = vmatpush3.bf16.msra.mxu0 %v3614_v15 }
 0x3d4   : > { %2734 = vmatprep.subr.bf16.mxu0 %v3209_v1 }
 0x3d5   : > { %2753 = vmatpush3.bf16.msra.mxu1 %v3618_v18 }
 0x3d6   : > { %2754 = vmatprep.subr.bf16.mxu1 %v3209_v1 }
 0x3d7   : > { %2735 = vmatpush3.bf16.msra.mxu0 %v3624_v20 }
 0x3d8   : > { %2736 = vmatprep.subr.bf16.mxu0 %v3209_v1 }
 0x3d9   : > { %2755 = vmatpush3.bf16.msra.mxu1 %v3628_v21 }
 0x3da   : > { %2756 = vmatprep.subr.bf16.mxu1 %v3209_v1 }
 0x3db   : > { %2737 = vmatpush3.bf16.msra.mxu0 %v3634_v22 }
 0x3dc   : > { %2738 = vmatprep.subr.bf16.mxu0 %v3209_v1 }
 0x3dd   : > { %2757 = vmatpush3.bf16.msra.mxu1 %v3645_v44 }
 0x3de   : > { %2758 = vmatprep.subr.bf16.mxu1 %v3209_v1 }
 0x3df   : > { %2739 = vmatpush3.bf16.msra.mxu0 %v3642_v41 }
 0x3e0   : > { %2740 = vmatprep.subr.bf16.mxu0 %v3209_v1 }
 0x3e1   : > { %2759 = vmatpush3.bf16.msra.mxu1 %v3655_v46 }
 0x3e2   : > { %2760 = vmatprep.subr.bf16.mxu1 %v3209_v1 }
 0x3e3   : > { %2741 = vmatpush3.bf16.msra.mxu0 %v3652_v45 }
 0x3e4   : > { %2742 = vmatprep.subr.bf16.mxu0 %v3209_v1 }
 0x3e5   : > { %2761 = vmatpush3.bf16.msra.mxu1 %v3663_v48 }
 0x3e6   : > { %2762 = vmatprep.subr.bf16.mxu1 %v3209_v1 }
 0x3e7   : > { %2743 = vmatpush3.bf16.msra.mxu0 %v3660_v47 }
 0x3e8   : > { %2744 = vmatprep.subr.bf16.mxu0 %v3209_v1 }
 0x3e9   : > { %2763 = vmatpush3.bf16.msra.mxu1 %v3673_v50 }
 0x3ea   : > { %2764 = vmatprep.subr.bf16.mxu1 %v3209_v1 }
 0x3eb   : > { %2745 = vmatpush3.bf16.msra.mxu0 %v3670_v49 }
 0x3ec   : > { %2770 = vmatprep.subr.bf16.mxu0 %v3209_v1 }
 0x3ed   : > { %2765 = vmatpush3.bf16.msra.mxu1 %v3682_v51 }
 0x3ee   : > { %2794 = vmatprep.subr.bf16.mxu1 %v3209_v1 }
 0x4a1   : > { %v1168_v4 = vpop.f32.mrb[8].mxu0 }
 0x4a2   : > { %v2708_v57 = vpop.f32.mrb[9].mxu0  ;;  %v1283_v59 = vsel %vm838_vm7, -1e+09, %v1168_v4 }
 0x4a3   : > { %v1275_v60 = vpop.f32.mrb[4].mxu1  ;;  %1285 = vmax.xlane.f32.xlu0 %v1283_v59  ;;  %v1171_v61 = vpop.f32.mrb[10].mxu0 }
 0x4a4   : > { %v2709_v63 = vpop.f32.mrb[11].mxu0  ;;  %v2728_v2 = vpop.f32.mrb[5].mxu1  ;;  %v1284_v5 = vsel %vm838_vm7, -1e+09, %v1275_v60  ;;  %v3704_v61 = vld [vmem:[%s4064_s9 + $0x8] sm:$0xff]  }
 0x4a5   : > { %1287 = vmax.xlane.f32.xlu1 %v1284_v5  ;;  %v1278_v6 = vpop.f32.mrb[6].mxu1 }
 0x4a6   : > { %v2729_v8 = vpop.f32.mrb[7].mxu1 }
 0x530   : > { %v1286_v25 = vpop.xlane.xlu0 %1285 }
 0x531   : > { %v1289_v27 = vsub.f32 %v1283_v59, %v1286_v25 }
 0x532   : > { %v1288_v29 = vpop.xlane.xlu1 %1287 }
 0x533   : > { %v1291_v31 = vmul.f32 1.442695, %v1289_v27  ;;  %v1290_v33 = vsub.f32 %v1284_v5, %v1288_v29  ;;  %v3041_v29 = vld [vmem:[%s4101_s5 + $0x30] sm:$0xff]  }
 0x535   : > { %3059 = vpow2.f32 %v1291_v31  ;;  %v1293_v35 = vmul.f32 1.442695, %v1290_v33  ;;  %v3042_v31 = vld [vmem:[%s4101_s5 + $0x38] sm:$0xff]   ;;  %v3043_v33 = vld [vmem:[%s4101_s5 + $0x40] sm:$0xff]  }
 0x537   : > { %3061 = vpow2.f32 %v1293_v35  ;;  %v3044_v35 = vld [vmem:[%s4101_s5 + $0x48] sm:$0xff]  }
 0x53f   : > { %v3060_v37 = vpop.eup %3059 }
 0x540   : > { %1295 = vadd.xlane.f32.xlu0 %v3060_v37 }
 0x541   : > { %v3062_v39 = vpop.eup %3061 }
 0x544   : > { %1297 = vadd.xlane.f32.xlu0 %v3062_v39 }
 0x5cd   : > { %v1296_v52 = vpop.xlane.xlu0 %1295 }
 0x5ce   : > { %3063 = vrcp.f32 %v1296_v52 }
 0x5d1   : > { %v1298_v53 = vpop.xlane.xlu0 %1297 }
 0x5d2   : > { %3065 = vrcp.f32 %v1298_v53 }
 0x5d8   : > { %v3064_v54 = vpop.eup %3063 }
 0x5d9   : > { %v1301_v55 = vmul.f32 %v3064_v54, %v3060_v37  ;;  %v3045_v37 = vld [vmem:[%s4101_s5 + $0x50] sm:$0xff]  }
 0x5db   : > { %v1303_v4 = vpack.c.bf16 %v1301_v55, %v1301_v55 }
 0x5dc   : > { %v3066_v57 = vpop.eup %3065 }
 0x5dd   : > { %2747 = vmatmul.mubr.bf16.vlgmr.msra.gmra.mrb[12].mxu0 %v1303_v4  ;;  %v1302_v59 = vmul.f32 %v3066_v57, %v3062_v39  ;;  %v3734_v39 = vld [vmem:[%s4065_s10] ss:$0 sm:$0xff] }
 0x5de   : > { %2771 = vmatpush3.bf16.msra.mxu0 %v3689_v3  ;;  %2774 = vmatprep.mubr.msk.bf16.mxu0 %vm3210_vm0, %v3209_v1 }
 0x5df   : > { %v1304_v60 = vpack.c.bf16 %v1302_v59, %v1302_v59  ;;  %2772 = vmatprep.subr.bf16.mxu0 %v3209_v1 }
 0x5e1   : > { %2767 = vmatmul.mubr.bf16.vlgmr.msra.gmra.mrb[8].mxu1 %v1304_v60 }
 0x5e2   : > { %2795 = vmatpush3.bf16.msra.mxu1 %v3466_v58  ;;  %2798 = vmatprep.mubr.msk.bf16.mxu1 %vm3210_vm0, %v3209_v1 }
 0x5e3   : > { %2796 = vmatprep.subr.bf16.mxu1 %v3209_v1  ;;  %2773 = vmatpush3.bf16.msra.mxu0 %v3704_v61 }
 0x5e4   : > { %2778 = vmatprep.subr.bf16.mxu0 %v3209_v1 }
 0x5e6   : > { %2797 = vmatpush3.bf16.msra.mxu1 %v3473_v62 }
 0x5e7   : > { %2802 = vmatprep.subr.bf16.mxu1 %v3209_v1 }
 0x6b0   : > { %v1387_v63 = vpop.f32.mrb[12].mxu0 }
 0x6b1   : > { %v2748_v58 = vpop.f32.mrb[13].mxu0 }
 0x6b2   : > { %v1390_v2 = vpop.f32.mrb[14].mxu0 }
 0x6b3   : > { %v2749_v5 = vpop.f32.mrb[15].mxu0 }
 0x6b4   : > { %v1475_v6 = vpop.f32.mrb[8].mxu1 }
 0x6b5   : > { %v1481_v8 = vpack.c.bf16 %v1475_v6, %v1387_v63  ;;  %v2768_v25 = vpop.f32.mrb[9].mxu1 }
 0x6b6   : > { %v1478_v27 = vpop.f32.mrb[10].mxu1 }
 0x6b7   : > { %v2769_v62 = vpop.f32.mrb[11].mxu1  ;;  %2775 = vmatmul.mubr.msk.bf16.vlgmr.msra.gmra.mrb[16].mxu0 %vm791_vm1, %v1481_v8  ;;  %v3046_v8 = vld [vmem:[%s4101_s5 + $0x58] sm:$0xff]  }
 0x6b8   : > { %2790 = vmatprep.mubr.msk.bf16.mxu0 %vm3210_vm0, %v3209_v1  ;;  %2779 = vmatpush3.bf16.msra.mxu0 %v3041_v29 }
 0x6b9   : > { %2780 = vmatprep.subr.bf16.mxu0 %v3209_v1 }
 0x6bc   : > { %2781 = vmatpush3.bf16.msra.mxu0 %v3042_v31 }
 0x6bd   : > { %2782 = vmatprep.subr.bf16.mxu0 %v3209_v1 }
 0x6c0   : > { %2783 = vmatpush3.bf16.msra.mxu0 %v3043_v33 }
 0x6c1   : > { %2784 = vmatprep.subr.bf16.mxu0 %v3209_v1 }
 0x6c4   : > { %2785 = vmatpush3.bf16.msra.mxu0 %v3044_v35 }
 0x6c5   : > { %2786 = vmatprep.subr.bf16.mxu0 %v3209_v1 }
 0x6c8   : > { %2787 = vmatpush3.bf16.msra.mxu0 %v3045_v37 }
 0x6c9   : > { %2788 = vmatprep.subr.bf16.mxu0 %v3209_v1 }
 0x6cc   : > { %2789 = vmatpush3.bf16.msra.mxu0 %v3046_v8 }
 0x6cd   : > { %2822 = vmatprep.subr.bf16.mxu0 %v3209_v1 }
 0x78a   : > { %v1531_v52 = vpop.f32.mrb[16].mxu0 }
 0x78b   : > { %v1532_v53 = vadd.f32 %v3734_v39, %v1531_v52  ;;  %v2776_v54 = vpop.f32.mrb[17].mxu0 }
 0x78c   : > { %v1534_v55 = vpop.f32.mrb[18].mxu0 }
 0x78d   : > { %v1538_v4 = vadd.f32 %v1532_v53, %v3522_v23  ;;  %v1535_v57 = vadd.f32 %v3734_v39, %v1534_v55  ;;  %v2777_v59 = vpop.f32.mrb[19].mxu0 }
 0x78f   : > { %v1540_v60 = vmul.f32 0.70710677, %v1538_v4  ;;  %v1539_v63 = vadd.f32 %v1535_v57, %v3524_v24 }
 0x791   : > { %v1542_v58 = vadd.f32 %v1540_v60, %v3434_v13  ;;  %v1541_v2 = vmul.f32 0.70710677, %v1539_v63 }
 0x793   : > { %v3741_v5 = vmul.f32 0.70710677, %v1542_v58  ;;  %v1543_v6 = vadd.f32 %v1541_v2, %v3437_v17 }
 0x795   : > { %v1548_v25 = vrot.slane %v3741_v5, 6  ;;  %v3748_v23 = vmul.f32 0.70710677, %v1543_v6 }
 0x797   : > { %v1549_v24 = vrot.slane %v3748_v23, 6  ;;  %v1552_v13 = vsel %vm845_vm2, 1.0, %v1548_v25  ;;  %v1569_v62 = vrot.slane %v1548_v25, 2  ;;  %v1557_v31 = vrot.slane %v1548_v25, 1 }
 0x798   : > { %v1568_v27 = vrot.slane %v1552_v13, 2  ;;  %v1556_v29 = vrot.slane %v1552_v13, 1 }
 0x799   : > { %v1553_v17 = vsel %vm845_vm2, 1.0, %v1549_v24  ;;  %v1572_v33 = vrot.slane %v1549_v24, 2  ;;  %v1560_v35 = vrot.slane %v1549_v24, 1 }
 0x79a   : > { %v1571_v37 = vrot.slane %v1553_v17, 2  ;;  %v1559_v52 = vrot.slane %v1553_v17, 1  ;;  %v1570_v53 = vsel %vm863_vm4, %v1568_v27, %v1569_v62  ;;  %v1558_v55 = vsel %vm850_vm3, %v1556_v29, %v1557_v31 }
 0x79c   : > { %v1573_v54 = vsel %vm863_vm4, %v1571_v37, %v1572_v33  ;;  %v1561_v4 = vsel %vm850_vm3, %v1559_v52, %v1560_v35 }
 0x79d   : > { %v2990_v57 = vpack.i.bf16 %v1573_v54, %v1570_v53  ;;  %v2985_v59 = vpack.i.bf16 %v1561_v4, %v1558_v55 }
 0x79f   : > { %2991 = vrot.lane.b32.xlu0 %v2990_v57, %s3212_s0  ;;  %2986 = vrot.lane.b32.xlu1 %v2985_v59, %s3211_s20  ;;  %s3951_s0 = scalar_lea.hbm %s4070_s15, %s4081_s21 }
 0x811   : > { %v2992_v60 = vpop.permute.xlu0 %2991  ;;  %v2987_v63 = vpop.permute.xlu1 %2986 }
 0x812   : > { %v2994_v58 = vunpack.i.h.bf16 %v2992_v60  ;;  %v2993_v2 = vunpack.i.l.bf16 %v2992_v60  ;;  %v2989_v6 = vunpack.i.h.bf16 %v2987_v63  ;;  %v2988_v8 = vunpack.i.l.bf16 %v2987_v63 }
 0x814   : > { %v1581_v25 = vsel %vm791_vm1, %v1553_v17, %v2989_v6  ;;  %v1580_v24 = vsel %vm791_vm1, %v1552_v13, %v2988_v8 }
 0x815   : > { %v1583_v27 = vsel %vm878_vm5, %v1581_v25, %v2994_v58  ;;  %v1582_v62 = vsel %vm878_vm5, %v1580_v24, %v2993_v2  ;;  %v3096_v58 = vld [vmem:[%s3389_s18 + $0x8] sm:$0xff] }
 0x816   : > { %v1597_v29 = vpack.c.bf16 %v1583_v27, %v1582_v62 }
 0x818   : > { %2791 = vmatmul.mubr.msk.bf16.vlgmr.msra.gmra.mrb[20].mxu0 %vm937_vm6, %v1597_v29 }
 0x819   : > { %2823 = vmatpush3.bf16.xpose.msra.mxu0 %v3479_v0  ;;  %2838 = vmatprep.mubr.msk.bf16.mxu0 %vm3210_vm0, %v3209_v1  ;;  %v2517_v0 = vld [vmem:[%s4061_s6 + $0x1] ss:$0 sm:$0xff] }
 0x81a   : > { %2824 = vmatprep.subr.bf16.mxu0 %v3209_v1 }
 0x821   : > { %2825 = vmatpush3.bf16.xpose.msra.mxu0 %v3487_v7 }
 0x822   : > { %2826 = vmatprep.subr.bf16.mxu0 %v3209_v1 }
 0x829   : > { %2827 = vmatpush3.bf16.xpose.msra.mxu0 %v3493_v9 }
 0x82a   : > { %2828 = vmatprep.subr.bf16.mxu0 %v3209_v1 }
 0x831   : > { %2829 = vmatpush3.bf16.xpose.msra.mxu0 %v3499_v11 }
 0x832   : > { %2830 = vmatprep.subr.bf16.mxu0 %v3209_v1 }
 0x839   : > { %2831 = vmatpush3.bf16.xpose.msra.mxu0 %v3505_v14 }
 0x83a   : > { %2832 = vmatprep.subr.bf16.mxu0 %v3209_v1 }
 0x841   : > { %2833 = vmatpush3.bf16.xpose.msra.mxu0 %v3511_v16 }
 0x842   : > { %2834 = vmatprep.subr.bf16.mxu0 %v3209_v1 }
 0x849   : > { %2835 = vmatpush3.bf16.xpose.msra.mxu0 %v3517_v19 }
 0x84a   : > { %2836 = vmatprep.subr.bf16.mxu0 %v3209_v1 }
 0x851   : > { %2837 = vmatpush3.bf16.xpose.msra.mxu0 %v3579_v42 }
 0x852   : > { %2862 = vmatprep.subr.bf16.mxu0 %v3209_v1 }
 0x8eb   : > { %v1679_v7 = vpop.f32.mrb[20].mxu0 }
 0x8ec   : > { %v1680_v9 = vadd.f32 %v2517_v0, %v1679_v7  ;;  %v2792_v11 = vpop.f32.mrb[21].mxu0 }
 0x8ed   : > { %v1682_v14 = vpop.f32.mrb[22].mxu0 }
 0x8ee   : > { %v2525_v13 = vmul.f32 -1.442695, %v1680_v9  ;;  %v1683_v16 = vadd.f32 %v2517_v0, %v1682_v14  ;;  %v2793_v31 = vpop.f32.mrb[23].mxu0 }
 0x8f0   : > { %3067 = vpow2.f32 %v2525_v13  ;;  %v2526_v17 = vmul.f32 -1.442695, %v1683_v16 }
 0x8f2   : > { %3069 = vpow2.f32 %v2526_v17 }
 0x8fa   : > { %v3068_v19 = vpop.eup %3067 }
 0x8fb   : > { %v1692_v33 = vadd.f32 1.0, %v3068_v19 }
 0x8fc   : > { %v3070_v35 = vpop.eup %3069 }
 0x8fd   : > { %3071 = vrcp.f32 %v1692_v33  ;;  %v1693_v42 = vadd.f32 1.0, %v3070_v35  ;;  %v3048_v33 = vld [vmem:[%s4066_s11 + $0x8] sm:$0xff]  }
 0x8ff   : > { %3073 = vrcp.f32 %v1693_v42 }
 0x907   : > { %v3072_v37 = vpop.eup %3071 }
 0x908   : > { %1700 = vrot.lane.b32.xlu1 %v3072_v37, %s3213_s22 }
 0x909   : > { %v3074_v52 = vpop.eup %3073 }
 0x90c   : > { %1702 = vrot.lane.b32.xlu1 %v3074_v52, %s3213_s22 }
 0x97a   : > { %v1701_v53 = vpop.permute.xlu1 %1700 }
 0x97b   : > { %v3788_v55 = vmul.f32 %v1701_v53, %v1680_v9 }
 0x97e   : > { %v1703_v54 = vpop.permute.xlu1 %1702 }
 0x97f   : > { %v3790_v4 = vmul.f32 %v1703_v54, %v1683_v16 }
 0x981   : > { %v1708_v57 = vpack.c.bf16 %v3790_v4, %v3788_v55 }
 0x983   : > { %2799 = vmatmul.mubr.msk.bf16.vlgmr.msra.gmra.mrb[12].mxu1 %vm791_vm1, %v1708_v57 }
 0x984   : > { %2803 = vmatpush3.bf16.xpose.msra.mxu1 %v3529_v26  ;;  %2818 = vmatprep.mubr.msk.bf16.mxu1 %vm3210_vm0, %v3209_v1 }
 0x985   : > { %2804 = vmatprep.subr.bf16.mxu1 %v3209_v1 }
 0x98c   : > { %2805 = vmatpush3.bf16.xpose.msra.mxu1 %v3538_v28 }
 0x98d   : > { %2806 = vmatprep.subr.bf16.mxu1 %v3209_v1 }
 0x994   : > { %2807 = vmatpush3.bf16.xpose.msra.mxu1 %v3544_v30 }
 0x995   : > { %2808 = vmatprep.subr.bf16.mxu1 %v3209_v1 }
 0x99c   : > { %2809 = vmatpush3.bf16.xpose.msra.mxu1 %v3550_v32 }
 0x99d   : > { %2810 = vmatprep.subr.bf16.mxu1 %v3209_v1 }
 0x9a4   : > { %2811 = vmatpush3.bf16.xpose.msra.mxu1 %v3556_v34  ;;  %v3095_v34 = vld [vmem:[%s3389_s18] sm:$0xff]  ;;  %s3860_s18 = sand.u32 1, %s3191_s25  }
 0x9a5   : > { %2812 = vmatprep.subr.bf16.mxu1 %v3209_v1  ;;  %s2436_s22 = sshll.u32 %s3860_s18, 4 }
 0x9a6   : > { %s3865_s28 = scalar_lea.vmem [#allocation7], %s2436_s22  ;;  %s3917_s3 = scalar_lea.vmem [#allocation5], %s2436_s22 }
 0x9a7   : > { %s2229_s22 = sshll.u32 %s3917_s3, 4  ;;  %s3943_s22 = int_to_ptr.vmem [resolvable:$true] %s2229_s22 }
 0x9a8   : > { %s3097_s24 = scalar_lea.vmem %s3943_s22, 256 }
 0x9a9   : > { %p3098_p12 = scmp.ne.s32.totalorder %s3943_s22, %s3097_s24 }
 0x9ab   : > { %p3099_p13 = pnand %p3098_p12, %p3350_p4 }
 0x9ac   : > { %2813 = vmatpush3.bf16.xpose.msra.mxu1 %v3562_v36 }
 0x9ad   : > { %2814 = vmatprep.subr.bf16.mxu1 %v3209_v1  ;;  %p3100_p0 = pneg %p3099_p13 }
 0x9b4   : > { %2815 = vmatpush3.bf16.xpose.msra.mxu1 %v3568_v38 }
 0x9b5   : > { %2816 = vmatprep.subr.bf16.mxu1 %v3209_v1 }
 0x9bc   : > { %2817 = vmatpush3.bf16.xpose.msra.mxu1 %v3574_v40 }
 0x9bd   : > { %2842 = vmatprep.subr.bf16.mxu1 %v3209_v1 }
 0xa56   : > { %v1746_v26 = vpop.f32.mrb[12].mxu1 }
 0xa57   : > { %v1747_v28 = vadd.f32 %v3587_v43, %v1746_v26  ;;  %v2800_v30 = vpop.f32.mrb[13].mxu1 }
 0xa58   : > { %v1749_v32 = vpop.f32.mrb[14].mxu1 }
 0xa59   : > { %v1753_v59 = vadd.f32 %v3095_v34, %v1747_v28  ;;  %v1750_v60 = vadd.f32 %v3587_v43, %v1749_v32  ;;  %v2801_v36 = vpop.f32.mrb[15].mxu1 }
 0xa5b   : > { %v1755_v63 = vmul.f32 0.70710677, %v1753_v59  ;;  %v1754_v2 = vadd.f32 %v3096_v58, %v1750_v60 }
 0xa5d   : > { %v1757_v38 = vpack.c.bf16 %v1755_v63, %v1755_v63  ;;  %v1756_v6 = vmul.f32 0.70710677, %v1754_v2 }
 0xa5f   : > { %v1758_v8 = vpack.c.bf16 %v1756_v6, %v1756_v6  ;;  %2819 = vmatmul.mubr.msk.bf16.vlgmr.msra.gmra.mrb[16].mxu1 %vm791_vm1, %v1757_v38 }
 0xa60   : > { %2843 = vmatpush3.bf16.msra.mxu1 %v3607_v10  ;;  %2858 = vmatprep.mubr.msk.bf16.mxu1 %vm3210_vm0, %v3209_v1 }
 0xa61   : > { %2839 = vmatmul.mubr.msk.bf16.vlgmr.msra.gmra.mrb[24].mxu0 %vm791_vm1, %v1758_v8  ;;  %2844 = vmatprep.subr.bf16.mxu1 %v3209_v1 }
 0xa62   : > { %2863 = vmatpush3.bf16.msra.mxu0 %v3610_v12  ;;  %2878 = vmatprep.mubr.msk.bf16.mxu0 %vm3210_vm0, %v3209_v1 }
 0xa63   : > { %2864 = vmatprep.subr.bf16.mxu0 %v3209_v1 }
 0xa64   : > { %2845 = vmatpush3.bf16.msra.mxu1 %v3614_v15 }
 0xa65   : > { %2846 = vmatprep.subr.bf16.mxu1 %v3209_v1 }
 0xa66   : > { %2865 = vmatpush3.bf16.msra.mxu0 %v3618_v18 }
 0xa67   : > { %2866 = vmatprep.subr.bf16.mxu0 %v3209_v1 }
 0xa68   : > { %2847 = vmatpush3.bf16.msra.mxu1 %v3624_v20 }
 0xa69   : > { %2848 = vmatprep.subr.bf16.mxu1 %v3209_v1 }
 0xa6a   : > { %2867 = vmatpush3.bf16.msra.mxu0 %v3628_v21 }
 0xa6b   : > { %2868 = vmatprep.subr.bf16.mxu0 %v3209_v1 }
 0xa6c   : > { %2849 = vmatpush3.bf16.msra.mxu1 %v3634_v22 }
 0xa6d   : > { %2850 = vmatprep.subr.bf16.mxu1 %v3209_v1 }
 0xa6e   : > { %2869 = vmatpush3.bf16.msra.mxu0 %v3645_v44 }
 0xa6f   : > { %2870 = vmatprep.subr.bf16.mxu0 %v3209_v1 }
 0xa70   : > { %2851 = vmatpush3.bf16.msra.mxu1 %v3642_v41 }
 0xa71   : > { %2852 = vmatprep.subr.bf16.mxu1 %v3209_v1 }
 0xa72   : > { %2871 = vmatpush3.bf16.msra.mxu0 %v3655_v46 }
 0xa73   : > { %2872 = vmatprep.subr.bf16.mxu0 %v3209_v1 }
 0xa74   : > { %2853 = vmatpush3.bf16.msra.mxu1 %v3652_v45 }
 0xa75   : > { %2854 = vmatprep.subr.bf16.mxu1 %v3209_v1 }
 0xa76   : > { %2873 = vmatpush3.bf16.msra.mxu0 %v3663_v48 }
 0xa77   : > { %2874 = vmatprep.subr.bf16.mxu0 %v3209_v1 }
 0xa78   : > { %2855 = vmatpush3.bf16.msra.mxu1 %v3660_v47 }
 0xa79   : > { %2856 = vmatprep.subr.bf16.mxu1 %v3209_v1 }
 0xa7a   : > { %2875 = vmatpush3.bf16.msra.mxu0 %v3673_v50 }
 0xa7b   : > { %2876 = vmatprep.subr.bf16.mxu0 %v3209_v1 }
 0xa7c   : > { %2857 = vmatpush3.bf16.msra.mxu1 %v3670_v49 }
 0xa7d   : > { %2882 = vmatprep.subr.bf16.mxu1 %v3209_v1 }
 0xa7e   : > { %2877 = vmatpush3.bf16.msra.mxu0 %v3682_v51 }
 0xa7f   : > { %2898 = vmatprep.subr.bf16.mxu0 %v3209_v1 }
 0xb32   : > { %v1796_v40 = vpop.f32.mrb[16].mxu1 }
 0xb33   : > { %v2820_v43 = vpop.f32.mrb[17].mxu1  ;;  %v1845_v10 = vsel %vm838_vm7, -1e+09, %v1796_v40  ;;  %v3214_v40 = vmov -inf  }
 0xb34   : > { %1847 = vmax.xlane.f32.xlu0 %v1845_v10  ;;  %v1799_v12 = vpop.f32.mrb[18].mxu1  ;;  %v1839_v15 = vpop.f32.mrb[24].mxu0  ;;  %2069 = vst.msk [vmem:[#allocation3] sm:$0xff] %vm2068_vm8, %v3214_v40  ;;  %2070 = vst.msk [vmem:[#allocation3 + $0x8] sm:$0xff] %vm2068_vm8, %v3214_v40  ;;  %v2535_v43 = vld [vmem:[%s4069_s14] ss:$0 sm:$0xff] }
 0xb35   : > { %v2821_v18 = vpop.f32.mrb[19].mxu1  ;;  %v2840_v20 = vpop.f32.mrb[25].mxu0  ;;  %v1846_v21 = vsel %vm838_vm7, -1e+09, %v1839_v15 }
 0xb36   : > { %1849 = vmax.xlane.f32.xlu1 %v1846_v21  ;;  %v1842_v22 = vpop.f32.mrb[26].mxu0 }
 0xb37   : > { %v2841_v41 = vpop.f32.mrb[27].mxu0 }
 0xb3b   : > { %v3921_v22 = vld [vmem:[#allocation3] sm:$0xff] }
 0xbc1   : > { %v1848_v44 = vpop.xlane.xlu0 %1847 }
 0xbc2   : > { %v1851_v45 = vsub.f32 %v1845_v10, %v1848_v44  ;;  %v3923_v44 = vld [vmem:[#allocation3 + $0x8] sm:$0xff] }
 0xbc3   : > { %v1850_v46 = vpop.xlane.xlu1 %1849 }
 0xbc4   : > { %v1853_v47 = vmul.f32 1.442695, %v1851_v45  ;;  %v1852_v48 = vsub.f32 %v1846_v21, %v1850_v46 }
 0xbc6   : > { %3075 = vpow2.f32 %v1853_v47  ;;  %v1855_v49 = vmul.f32 1.442695, %v1852_v48 }
 0xbc8   : > { %3077 = vpow2.f32 %v1855_v49 }
 0xbd0   : > { %v3076_v50 = vpop.eup %3075 }
 0xbd1   : > { %1857 = vadd.xlane.f32.xlu0 %v3076_v50 }
 0xbd2   : > { %v3078_v51 = vpop.eup %3077 }
 0xbd5   : > { %1859 = vadd.xlane.f32.xlu0 %v3078_v51 }
 0xc5e   : > { %v1858_v25 = vpop.xlane.xlu0 %1857 }
 0xc5f   : > { %3079 = vrcp.f32 %v1858_v25 }
 0xc62   : > { %v1860_v56 = vpop.xlane.xlu0 %1859 }
 0xc63   : > { %3081 = vrcp.f32 %v1860_v56 }
 0xc69   : > { %v3080_v24 = vpop.eup %3079 }
 0xc6a   : > { %v1863_v27 = vmul.f32 %v3080_v24, %v3076_v50 }
 0xc6c   : > { %v1865_v62 = vpack.c.bf16 %v1863_v27, %v1863_v27  ;;  %2066 = vst [vmem:[%s3865_s28] sm:$0xff] %v1863_v27 }
 0xc6d   : > { %v3082_v29 = vpop.eup %3081 }
 0xc6e   : > { %2859 = vmatmul.mubr.bf16.vlgmr.msra.gmra.mrb[20].mxu1 %v1865_v62  ;;  %v1864_v0 = vmul.f32 %v3082_v29, %v3078_v51 }
 0xc6f   : > { %2883 = vmatpush3.bf16.msra.mxu1 %v3689_v3  ;;  %2886 = vmatprep.mubr.msk.bf16.mxu1 %vm3210_vm0, %v3209_v1 }
 0xc70   : > { %v1866_v7 = vpack.c.bf16 %v1864_v0, %v1864_v0  ;;  %2884 = vmatprep.subr.bf16.mxu1 %v3209_v1  ;;  %2067 = vst [vmem:[%s3865_s28 + $0x8] sm:$0xff] %v1864_v0 }
 0xc72   : > { %2879 = vmatmul.mubr.bf16.vlgmr.msra.gmra.mrb[28].mxu0 %v1866_v7 }
 0xc73   : > { %2885 = vmatpush3.bf16.msra.mxu1 %v3704_v61  ;;  %2902 = vmatprep.mubr.msk.bf16.mxu0 %vm3210_vm0, %v3209_v1  ;;  %v3047_v61 = vld [vmem:[%s4066_s11] sm:$0xff]  }
 0xc74   : > { %2890 = vmatprep.subr.bf16.mxu1 %v3209_v1 }
 0xd41   : > { %v1901_v9 = vpop.f32.mrb[20].mxu1 }
 0xd42   : > { %v2860_v11 = vpop.f32.mrb[21].mxu1 }
 0xd43   : > { %v1904_v14 = vpop.f32.mrb[22].mxu1 }
 0xd44   : > { %v2861_v13 = vpop.f32.mrb[23].mxu1 }
 0xd45   : > { %v1941_v3 = vpop.f32.mrb[28].mxu0 }
 0xd46   : > { %v1947_v16 = vpack.c.bf16 %v1941_v3, %v1901_v9  ;;  %v2880_v31 = vpop.f32.mrb[29].mxu0 }
 0xd47   : > { %v1944_v17 = vpop.f32.mrb[30].mxu0 }
 0xd48   : > { %v2881_v19 = vpop.f32.mrb[31].mxu0  ;;  %2887 = vmatmul.mubr.msk.bf16.vlgmr.msra.gmra.mrb[24].mxu1 %vm791_vm1, %v1947_v16 }
 0xd49   : > { %2894 = vmatprep.mubr.msk.bf16.mxu1 %vm3210_vm0, %v3209_v1  ;;  %2891 = vmatpush3.bf16.msra.mxu1 %v3047_v61 }
 0xd4a   : > { %2892 = vmatprep.subr.bf16.mxu1 %v3209_v1 }
 0xd4d   : > { %2893 = vmatpush3.bf16.msra.mxu1 %v3048_v33 }
 0xe1b   : > { %v1985_v35 = vpop.f32.mrb[24].mxu1 }
 0xe1c   : > { %v1986_v42 = vadd.f32 %v3734_v39, %v1985_v35  ;;  %v2888_v37 = vpop.f32.mrb[25].mxu1 }
 0xe1d   : > { %v1988_v52 = vpop.f32.mrb[26].mxu1 }
 0xe1e   : > { %v1992_v53 = vadd.f32 %v1986_v42, %v3788_v55  ;;  %v1989_v54 = vadd.f32 %v3734_v39, %v1988_v52  ;;  %v2889_v57 = vpop.f32.mrb[27].mxu1  ;;  %v3049_v55 = vld [vmem:[%s4068_s13] sm:$0xff]   ;;  %v3050_v39 = vld [vmem:[%s4068_s13 + $0x8] sm:$0xff]  }
 0xe1f   : > { %2899 = vmatpush3.bf16.msra.mxu0 %v3049_v55 }
 0xe20   : > { %v1994_v26 = vmul.f32 0.70710677, %v1992_v53  ;;  %v1993_v28 = vadd.f32 %v1989_v54, %v3790_v4  ;;  %2900 = vmatprep.subr.bf16.mxu0 %v3209_v1  ;;  %v3215_v1 = vmov 0  }
 0xe21   : > { %2995 = vset.pattern.permute.xlu1 %v3215_v1  ;;  %2996 = vset.pattern.permute.xlu0 %v3215_v1 }
 0xe22   : > { %v1996_v30 = vadd.f32 %v1994_v26, %v3741_v5  ;;  %v1995_v32 = vmul.f32 0.70710677, %v1993_v28  ;;  %v2531_v5 = vld [vmem:[%s4067_s12] ss:$0 sm:$0xff] }
 0xe23   : > { %2901 = vmatpush3.bf16.msra.mxu0 %v3050_v39 }
 0xe24   : > { %v1997_v34 = vadd.f32 %v1995_v32, %v3748_v23  ;;  %v1998_v59 = vmul.f32 0.70710677, %v1996_v30 }
 0xe26   : > { %v1999_v60 = vmul.f32 0.70710677, %v1997_v34 }
 0xe28   : > { %v2000_v36 = vpack.c.bf16 %v1999_v60, %v1998_v59 }
 0xe2a   : > { %2895 = vmatmul.mubr.msk.bf16.vlgmr.msra.gmra.mrb[28].mxu1 %vm791_vm1, %v2000_v36 }
 0xefd   : > { %v2057_v23 = vpop.f32.mrb[28].mxu1 }
 0xefe   : > { %v2896_v4 = vpop.f32.mrb[29].mxu1  ;;  %v2058_v58 = vadd.f32 %v2531_v5, %v2057_v23 }
 0xeff   : > { %v2060_v63 = vpop.f32.mrb[30].mxu1 }
 0xf00   : > { %v2061_v2 = vadd.f32 %v2531_v5, %v2060_v63  ;;  %v2897_v38 = vpop.f32.mrb[31].mxu1 }
 0xf02   : > { %v2064_v6 = vpack.c.bf16 %v2061_v2, %v2058_v58 }
 0xf04   : > { %2065 = vst.msk [vmem:[#allocation2] sm:$0xff] %vm791_vm1, %v2064_v6 }
 0xf0b   : > { %v2073_v8 = vld [vmem:[#allocation2] sm:$0xff] }
 0xf0c   : > { %2903 = vmatmul.mubr.msk.bf16.vlgmr.msra.gmra.mrb[32].mxu0 %vm791_vm1, %v2073_v8 }
 0xfdf   : > { %v2135_v10 = vpop.f32.mrb[32].mxu0 }
 0xfe0   : > { %v2136_v12 = vadd.f32 %v2535_v43, %v2135_v10  ;;  %v2904_v15 = vpop.f32.mrb[33].mxu0 }
 0xfe1   : > { %v2138_v18 = vpop.f32.mrb[34].mxu0 }
 0xfe2   : > { %2187 = vst [vmem:[%s3917_s3] sm:$0xff] %v2136_v12  ;;  %v2139_v20 = vadd.f32 %v2535_v43, %v2138_v18  ;;  %2142 = vmax.xlane.f32.xlu1 %v2136_v12  ;;  %v2905_v21 = vpop.f32.mrb[35].mxu0 }
 0xfe4   : > { %2188 = vst [vmem:[%s3917_s3 + $0x8] sm:$0xff] %v2139_v20  ;;  %2144 = vmax.xlane.f32.xlu0 %v2139_v20  ;;  %s3101_s3 = sshll.u32 %s3216_s29, 4  ;;  %s3102_s3 = int_to_ptr.vmem [resolvable:$false] %s3101_s3 }
 0xfe5   : > { %s3103_s23 = scalar_lea.vmem %s3102_s3, 512  ;;  %p3104_p1 = scmp.lt.s32.totalorder %s3943_s22, %s3102_s3 }
 0xfe6   : > { %p3105_p2 = scmp.lt.s32.totalorder %s3103_s23, %s3097_s24 }
 0xfe8   : > { %p3106_p3 = por %p3105_p2, %p3104_p1 }
 0xfea   : > { %p3107_p5 = pnand %p3106_p3, %p3100_p0 }
0x106f   : > { %v2143_v41 = vpop.xlane.xlu1 %2142 }
0x1070   : > { %v3926_v45 = vmax.f32 %v3921_v22, %v2143_v41 }
0x1071   : > { %v2145_v46 = vpop.xlane.xlu0 %2144 }
0x1072   : > { %v2152_v47 = vsub.f32 %v3921_v22, %v3926_v45  ;;  %2185 = vst.msk [vmem:[#allocation3] sm:$0xff] %vm2068_vm8, %v3926_v45  ;;  %v3933_v48 = vmax.f32 %v3923_v44, %v2145_v46  ;;  %2162 = vperm.xlu1 %2995, %v3926_v45  }
0x1074   : > { %v2153_v49 = vsub.f32 %v3923_v44, %v3933_v48  ;;  %2186 = vst.msk [vmem:[#allocation3 + $0x8] sm:$0xff] %vm2068_vm8, %v3933_v48  ;;  %2167 = vperm.xlu0 %2996, %v3933_v48  }
0x10f1   : > { %v2163_v50 = vpop.permute.xlu1 %2162 }
0x10f2   : > { %v2170_v51 = vsub.f32 %v2136_v12, %v2163_v50 }
0x10f3   : > { %v2168_v25 = vpop.permute.xlu0 %2167 }
0x10f4   : > { %v2172_v56 = vmul.f32 1.442695, %v2170_v51  ;;  %v2171_v24 = vsub.f32 %v2139_v20, %v2168_v25 }
0x10f6   : > { %3083 = vpow2.f32 %v2172_v56  ;;  %v2174_v27 = vmul.f32 1.442695, %v2171_v24 }
0x10f8   : > { %3085 = vpow2.f32 %v2174_v27 }
0x1100   : > { %v3084_v62 = vpop.eup %3083 }
0x1101   : > { %2176 = vadd.xlane.f32.xlu1 %v3084_v62 }
0x1102   : > { %v3086_v29 = vpop.eup %3085 }
0x1103   : > { %2178 = vadd.xlane.f32.xlu0 %v3086_v29 }
0x1104   : > { %3110 = shalt.err (!%p3107_p5)
}
0x1105   : > { %s3111_s30 = scalar_lea.hbm %s3951_s0, 256  ;;  %s3115_s29 = scalar_lea.hbm %s4070_s15, 512 }
0x1106   : > { %p3112_p6 = scmp.ne.s32.totalorder %s3951_s0, %s3111_s30  ;;  %p3116_p10 = scmp.lt.u32.totalorder %s3951_s0, %s4070_s15 }
0x1107   : > { %p3117_p11 = scmp.lt.u32.totalorder %s3115_s29, %s3111_s30  ;;  %p3119_p13 = scmp.lt.u32.totalorder %s3111_s30, %s3951_s0 }
0x1108   : > { %p3113_p7 = pnand %p3112_p6, %p3350_p4 }
0x1109   : > { %p3118_p12 = por %p3117_p11, %p3116_p10 }
0x110a   : > { %p3114_p9 = pneg %p3113_p7 }
0x110b   : > { %p3120_p0 = por %p3119_p13, %p3118_p12 }
0x110d   : > { %p3121_p1 = pnand %p3120_p0, %p3114_p9 }
0x110f   : > { %3124 = shalt.err (!%p3121_p1)
}
0x1110   : > { %s3217_s23 = smov 128   ;;  %s3218_s21 = smov 8  }
0x1111   : > { %s4103_s26 = scalar_lea.sflag [#allocation6], %s3860_s18  ;;  %s4104_s24 = sshll.u32 %s3199_s27, 8 }
0x1112   : > { %2906 = dma.vmem_to_hbm [thread:$0]  (%p3350_p4), %s3943_s22, 256, %s3951_s0, %s4103_s26, %s3217_s23, %s3217_s23, %s3218_s21  }
0x1113   : > { %s3985_s29 = scalar_lea.hbm %s4072_s17, %s4104_s24  ;;  %s4105_s3 = sshll.u32 %s3865_s28, 4  ;;  %s3989_s3 = int_to_ptr.vmem [resolvable:$true] %s4105_s3 }
0x1114   : > { %s2215_s2 = scalar_lea.sflag [#allocation8], %s3860_s18  ;;  %s3125_s4 = scalar_lea.vmem %s3989_s3, 256 }
0x1115   : > { %p3126_p2 = scmp.ne.s32.totalorder %s3989_s3, %s3125_s4  ;;  %s3219_s5 = smov [#allocation7]  }
0x1116   : > { %s3129_s22 = sshll.u32 %s3219_s5, 4  ;;  %s3130_s22 = int_to_ptr.vmem [resolvable:$false] %s3129_s22 }
0x1117   : > { %p3127_p3 = pnand %p3126_p2, %p3350_p4  ;;  %s3131_s27 = scalar_lea.vmem %s3130_s22, 512 }
0x1118   : > { %p3132_p6 = scmp.lt.s32.totalorder %s3989_s3, %s3130_s22  ;;  %p3133_p7 = scmp.lt.s32.totalorder %s3131_s27, %s3125_s4 }
0x1119   : > { %p3128_p5 = pneg %p3127_p3 }
0x111a   : > { %p3134_p9 = por %p3133_p7, %p3132_p6 }
0x111c   : > { %p3135_p10 = pnand %p3134_p9, %p3128_p5 }
0x111e   : > { %3138 = shalt.err (!%p3135_p10)
}
0x111f   : > { %s3139_s28 = scalar_lea.hbm %s3985_s29, 256  ;;  %s3143_s5 = scalar_lea.hbm %s4072_s17, 512 }
0x1120   : > { %p3140_p11 = scmp.ne.s32.totalorder %s3985_s29, %s3139_s28  ;;  %p3144_p0 = scmp.lt.u32.totalorder %s3985_s29, %s4072_s17 }
0x1121   : > { %p3145_p1 = scmp.lt.u32.totalorder %s3143_s5, %s3139_s28  ;;  %p3147_p3 = scmp.lt.u32.totalorder %s3139_s28, %s3985_s29 }
0x1122   : > { %p3141_p12 = pnand %p3140_p11, %p3350_p4 }
0x1123   : > { %p3146_p2 = por %p3145_p1, %p3144_p0 }
0x1124   : > { %p3142_p13 = pneg %p3141_p12 }
0x1125   : > { %p3148_p5 = por %p3147_p3, %p3146_p2 }
0x1127   : > { %p3149_p6 = pnand %p3148_p5, %p3142_p13 }
0x1129   : > { %3152 = shalt.err (!%p3149_p6)
}
0x112a   : > { %2907 = dma.vmem_to_hbm [thread:$0]  (%p3350_p4), %s3989_s3, 256, %s3985_s29, %s2215_s2, %s3217_s23, %s3217_s23, %s3218_s21   ;;  %v2154_v0 = vmul.f32 1.442695, %v2152_v47  ;;  %v2156_v7 = vmul.f32 1.442695, %v2153_v49  ;;  %v2150_v11 = vld [vmem:[#allocation4] sm:$0xff] }
0x112b   : > { %v2151_v13 = vld [vmem:[#allocation4 + $0x8] sm:$0xff]  ;;  %s4106_s2 = sshll.u32 %s4119_s19, 3  ;;  %v2192_v53 = vld [vmem:[#allocation3] sm:$0xff]  ;;  %v2193_v26 = vld [vmem:[#allocation3 + $0x8] sm:$0xff] }
0x112c   : > { %3087 = vpow2.f32 %v2154_v0  ;;  %s667_s18 = scalar_lea.vmem %s4071_s16, %s4106_s2 }
0x112d   : > { %3089 = vpow2.f32 %v2156_v7 }
0x1136   : > { %v3088_v9 = vpop.eup %3087 }
0x1137   : > { %v3090_v14 = vpop.eup %3089  ;;  %v2158_v3 = vmul.f32 %v3088_v9, %v2150_v11 }
0x1138   : > { %v2159_v17 = vmul.f32 %v3090_v14, %v2151_v13 }
0x118e   : > { %v2177_v16 = vpop.xlane.xlu1 %2176 }
0x118f   : > { %v2180_v31 = vadd.f32 %v2177_v16, %v2158_v3 }
0x1190   : > { %v2179_v19 = vpop.xlane.xlu0 %2178 }
0x1191   : > { %2183 = vst.msk [vmem:[#allocation4] sm:$0xff] %vm2068_vm8, %v2180_v31  ;;  %v2181_v61 = vadd.f32 %v2179_v19, %v2159_v17 }
0x1193   : > { %2184 = vst.msk [vmem:[#allocation4 + $0x8] sm:$0xff] %vm2068_vm8, %v2181_v61 }
0x1198   : > { %v2194_v33 = vld [vmem:[#allocation4] sm:$0xff] }
0x1199   : > { %3091 = vlog2.f32 %v2194_v33 }
0x119a   : > { %v2195_v35 = vld [vmem:[#allocation4 + $0x8] sm:$0xff] }
0x119b   : > { %3093 = vlog2.f32 %v2195_v35 }
0x11a3   : > { %v3092_v42 = vpop.eup %3091 }
0x11a4   : > { %v2197_v37 = vmul.f32 0.6931472, %v3092_v42 }
0x11a5   : > { %v3094_v52 = vpop.eup %3093 }
0x11a6   : > { %v2200_v54 = vadd.f32 %v2197_v37, %v2192_v53  ;;  %v2199_v57 = vmul.f32 0.6931472, %v3094_v52 }
0x11a8   : > { %2202 = vst.msk [vmem:[%s667_s18] sm:$0xff] %vm2068_vm8, %v2200_v54  ;;  %v2201_v28 = vadd.f32 %v2199_v57, %v2193_v26 }
0x11aa   : > { %2203 = vst.msk [vmem:[%s667_s18 + $0x8] sm:$0xff] %vm2068_vm8, %v2201_v28 }
0x11ab PF: > { %s4107_s23 = sld [smem:[#allocation14_spill]]  ;;  %s4108_s21 = sld [smem:[#allocation11_spill]] }
0x11b1   : > { %p2917_p4 = scmp.ge.s32.totalorder %s4107_s23, 2  ;;  %s2264_s29 = sand.u32 1, %s4108_s21  }
0x11b2   : > { %s2265_s19 = scalar_lea.sflag [#allocation6], %s2264_s29 }
0x11b3   : > { %p2911_p7 = pnand %p2917_p4, %p3357_p8 }
0x11b5   : > { %3178 = dma.done.wait (!%p2911_p7), %s2265_s19, 256  }
0x11b6   : > { %3180 = vsyncadd (!%p2911_p7), %s2265_s19, 4294967040  ;;  %s2282_s3 = scalar_lea.sflag [#allocation8], %s2264_s29 }
0x11b7   : > { %3182 = dma.done.wait (!%p2911_p7), %s2282_s3, 256  }
0x11b8   : > { %3184 = vsyncadd (!%p2911_p7), %s2282_s3, 4294967040  ;;  %s34_s29 = sadd.s32 1, %s4107_s23   ;;  %s4110_s22 = sld [smem:[#allocation12_spill]] }
0x11b9   : > { %p31_p9 = scmp.ge.s32.totalorder %s34_s29, 4   ;;  %s4111_s26 = sld [smem:[#allocation17_spill]] }
0x11ba   : > { %s4112_s27 = sld [smem:[#allocation13_spill]]  ;;  %s4113_s28 = sld [smem:[#allocation15_spill]] }
0x11bb   : > { %s4114_s24 = smov %s3191_s25  ;;  %33 = sbr.rel (!%p31_p9) target bundleno = 13 (0xd), region = 166 }
0x11be   : > { %s4115_s25 = smov %s4110_s22 }
0x11c2   :  { %2287 = vsyncpa [#allocation6], 1 }
0x11c3   :  { %2289 = vsyncpa [#allocation6 + $0x1], 1 }
0x11c4   :  { %2290 = vsyncpa [#allocation8], 1 }
0x11c5   :  { %2292 = vsyncpa [#allocation8 + $0x1], 1 }

</bundles_post_ra>
